<compile_context>
chip_gen: v5e
topology: v5e:2x2
jax: 0.10.0
libtpu: 0.0.40
codegen_flags: <defaults>
</compile_context>

<pallas_src>
import functools

import jax
import jax.numpy as jnp
from jax import lax
from jax.experimental import pallas as pl
from jax.experimental.pallas import tpu as pltpu


def _round_up(n, m):
    return (n + m - 1) // m * m


def _pick_chunk(T, max_chunk=32):
    """Largest divisor of T that is <= max_chunk (>=1)."""
    for c in range(min(T, max_chunk), 0, -1):
        if T % c == 0:
            return c
    return 1


def lstm_kernel(x_ref, wih_ref, whh_ref, b_ref, wlin_ref, blin_ref,
                y_ref, h_scr, c_scr, ml_scr, *, prediction):
    """One grid step = one chunk of T_chunk timesteps.

    x_ref    : (T_chunk, Bp, D_i)  time-major input chunk
    wih_ref  : (D_i,  4*D_hp)      gate-block padded, gate order i|f|g|o
    whh_ref  : (D_hp, 4*D_hp)      gate-block padded
    b_ref    : (1,    4*D_hp)      bias_ih + bias_hh, gate-block padded
    wlin_ref : (D_hp, Np)          padded linear weight (Np = 128)
    blin_ref : (1,    Np)
    y_ref    : (Bp, Np)            lane-dense output (written once, last chunk)
    h_scr/c_scr : (Bp, D_hp)       LSTM state, persists across grid steps
    ml_scr   : (Bp, Np)            running max of logits (prediction mode only)
    """
    t_chunk, Bp, D_i = x_ref.shape
    D_hp = h_scr.shape[1]
    G = 4 * D_hp

    tc = pl.program_id(0)
    n_tc = pl.num_programs(0)

    @pl.when(tc == 0)
    def _init():
        h_scr[...] = jnp.zeros_like(h_scr)
        c_scr[...] = jnp.zeros_like(c_scr)
        if prediction:
            ml_scr[...] = jnp.full_like(ml_scr, -jnp.inf)

    # ---- Phase 1: input projection for the whole chunk as ONE matmul ----
    x_flat = x_ref[...].reshape(t_chunk * Bp, D_i)
    gx = (jnp.dot(x_flat, wih_ref[...], preferred_element_type=jnp.float32)
          + b_ref[...]).reshape(t_chunk, Bp, G)

    # ---- Phase 2: recurrence -- one (Bp,D_hp)@(D_hp,4*D_hp) matmul / step ----
    h = h_scr[...]
    c = c_scr[...]
    whh = whh_ref[...]
    hs = []
    for tt in range(t_chunk):                      # fully unrolled, static idx
        gates = gx[tt] + jnp.dot(h, whh, preferred_element_type=jnp.float32)
        i_g = jax.nn.sigmoid(gates[:, 0 * D_hp:1 * D_hp])   # 128-lane aligned
        f_g = jax.nn.sigmoid(gates[:, 1 * D_hp:2 * D_hp])
        g_g = jnp.tanh(gates[:, 2 * D_hp:3 * D_hp])
        o_g = jax.nn.sigmoid(gates[:, 3 * D_hp:4 * D_hp])
        c = f_g * c + i_g * g_g
        h = o_g * jnp.tanh(c)
        if prediction:
            hs.append(h)
    h_scr[...] = h
    c_scr[...] = c

    if prediction:
        # one (T_chunk*Bp, D_hp)@(D_hp, Np) matmul per chunk; running max of
        # LOGITS (sigmoid is monotone), sigmoid applied once at the end.
        h_all = jnp.stack(hs, axis=0).reshape(t_chunk * Bp, D_hp)
        logits = (jnp.dot(h_all, wlin_ref[...],
                          preferred_element_type=jnp.float32)
                  + blin_ref[...]).reshape(t_chunk, Bp, -1)
        ml_new = jnp.maximum(ml_scr[...], jnp.max(logits, axis=0))
        ml_scr[...] = ml_new

        @pl.when(tc == n_tc - 1)
        def _final_pred():
            y_ref[...] = jax.nn.sigmoid(ml_new)
    else:
        @pl.when(tc == n_tc - 1)
        def _final():
            logits = (jnp.dot(h, wlin_ref[...],
                              preferred_element_type=jnp.float32)
                      + blin_ref[...])
            y_ref[...] = jax.nn.sigmoid(logits)


def _prep_params(params, D_i, D_h, D_hp, Np):
    """Transpose + gate-block pad weights so all in-kernel slices are
    128-lane aligned. Padded rows/cols are zero, so padded h/c stay exactly 0."""
    w_ih = params["w_ih"].astype(jnp.float32)     # (4*D_h, D_i)
    w_hh = params["w_hh"].astype(jnp.float32)     # (4*D_h, D_h)
    b = (params["b_ih"] + params["b_hh"]).astype(jnp.float32)
    w_lin = params["w_lin"].astype(jnp.float32)   # (n_out, D_h)
    b_lin = params["b_lin"].astype(jnp.float32)
    n_out = w_lin.shape[0]
    G = 4 * D_hp

    wih_p = jnp.zeros((D_i, G), jnp.float32)
    whh_p = jnp.zeros((D_hp, G), jnp.float32)
    b_p = jnp.zeros((1, G), jnp.float32)
    for k in range(4):                             # gate order i|f|g|o
        wih_p = wih_p.at[:, k * D_hp:k * D_hp + D_h].set(
            w_ih[k * D_h:(k + 1) * D_h, :].T)
        whh_p = whh_p.at[:D_h, k * D_hp:k * D_hp + D_h].set(
            w_hh[k * D_h:(k + 1) * D_h, :].T)
        b_p = b_p.at[0, k * D_hp:k * D_hp + D_h].set(b[k * D_h:(k + 1) * D_h])

    wlin_p = jnp.zeros((D_hp, Np), jnp.float32).at[:D_h, :n_out].set(w_lin.T)
    blin_p = jnp.zeros((1, Np), jnp.float32).at[0, :n_out].set(b_lin)
    return wih_p, whh_p, b_p, wlin_p, blin_p


def lstm_model_forward(x, params, *, prediction=False, t_chunk=None):
    """x: (B, T, D_i) float32 (PyTorch batch_first). Returns (B, 5) float32."""
    B, T, D_i = x.shape
    D_h = params["w_hh"].shape[1]                  # torch weight_hh: (4*D_h, D_h)
    n_out = params["w_lin"].shape[0]

    D_hp = _round_up(D_h, 128)                     # 128-lane aligned gate blocks
    Np = _round_up(n_out, 128)                     # lane-dense output slab
    Bp = _round_up(B, 8)                           # f32 sublane count
    G = 4 * D_hp

    if t_chunk is None:
        t_chunk = _pick_chunk(T)
    assert T % t_chunk == 0, "t_chunk must divide T"
    n_chunks = T // t_chunk

    # batch-pad then go time-major (kernel consumes (T, Bp, D_i))
    x_p = jnp.zeros((Bp, T, D_i), jnp.float32).at[:B].set(x.astype(jnp.float32))
    x_tm = jnp.transpose(x_p, (1, 0, 2))
    # TODO(synk): for long sequences, fold this transpose into a wrapper-side
    # x @ W_ih precompute (layout-agnostic) to avoid the extra HBM round trip.

    wih_p, whh_p, b_p, wlin_p, blin_p = _prep_params(params, D_i, D_h, D_hp, Np)

    kernel = functools.partial(lstm_kernel, prediction=prediction)
    grid_spec = pltpu.PrefetchScalarGridSpec(
        num_scalar_prefetch=0,
        grid=(n_chunks,),
        in_specs=[
            pl.BlockSpec((t_chunk, Bp, D_i), lambda t: (t, 0, 0)),  # stream x
            pl.BlockSpec((D_i, G), lambda t: (0, 0)),               # resident
            pl.BlockSpec((D_hp, G), lambda t: (0, 0)),
            pl.BlockSpec((1, G), lambda t: (0, 0)),
            pl.BlockSpec((D_hp, Np), lambda t: (0, 0)),
            pl.BlockSpec((1, Np), lambda t: (0, 0)),
        ],
        out_specs=pl.BlockSpec((Bp, Np), lambda t: (0, 0)),         # accumulator
        scratch_shapes=[
            pltpu.VMEM((Bp, D_hp), jnp.float32),   # h state
            pltpu.VMEM((Bp, D_hp), jnp.float32),   # c state
            pltpu.VMEM((Bp, Np), jnp.float32),     # running max of logits
        ],
    )
    y_p = pl.pallas_call(
        kernel,
        out_shape=jax.ShapeDtypeStruct((Bp, Np), jnp.float32),
        grid_spec=grid_spec,
        compiler_params=pltpu.CompilerParams(
            dimension_semantics=("arbitrary",)),   # sequential recurrence over T
    )(x_tm, wih_p, whh_p, b_p, wlin_p, blin_p)
    return y_p[:B, :n_out]


def init_params(key, D_i, D_h, n_out=5):
    """Deterministic init matching PyTorch's U(-1/sqrt(D_h), 1/sqrt(D_h))."""
    ks = jax.random.split(key, 6)
    k = 1.0 / jnp.sqrt(D_h)
    u = lambda kk, shape: jax.random.uniform(kk, shape, jnp.float32, -k, k)
    return {
        "w_ih": u(ks[0], (4 * D_h, D_i)),
        "w_hh": u(ks[1], (4 * D_h, D_h)),
        "b_ih": u(ks[2], (4 * D_h,)),
        "b_hh": u(ks[3], (4 * D_h,)),
        "w_lin": u(ks[4], (n_out, D_h)),
        "b_lin": u(ks[5], (n_out,)),
    }


def lstm_model_ref(x, params, *, prediction=False):
    """Pure-JAX reference with identical semantics (for validation)."""
    w_ih, w_hh = params["w_ih"], params["w_hh"]
    b_ih, b_hh = params["b_ih"], params["b_hh"]
    w_lin, b_lin = params["w_lin"], params["b_lin"]
    B, T, D_i = x.shape
    D_h = w_hh.shape[1]

    def step(carry, x_t):
        h, c = carry
        gates = x_t @ w_ih.T + b_ih + h @ w_hh.T + b_hh
        i, f, g, o = jnp.split(gates, 4, axis=-1)
        i, f, o = jax.nn.sigmoid(i), jax.nn.sigmoid(f), jax.nn.sigmoid(o)
        g = jnp.tanh(g)
        c = f * c + i * g
        h = o * jnp.tanh(c)
        return (h, c), h

    init = (jnp.zeros((B, D_h), jnp.float32), jnp.zeros((B, D_h), jnp.float32))
    (h_T, _), outs = lax.scan(step, init, jnp.transpose(x, (1, 0, 2)))
    if prediction:
        p = jax.nn.sigmoid(outs @ w_lin.T + b_lin)   # (T, B, 5)
        return jnp.max(p, axis=0)
    return jax.nn.sigmoid(h_T @ w_lin.T + b_lin)


if __name__ == "__main__":
    B, T, D_i, D_h = 2, 8, 16, 32

    key = jax.random.PRNGKey(0)
    kx, kp = jax.random.split(key)
    x = jax.random.normal(kx, (B, T, D_i), dtype=jnp.float32)
    params = init_params(kp, D_i, D_h)

    # default branch (prediction=False): y = sigmoid(linear(h_n))
    y = jax.block_until_ready(
        lstm_model_forward(x, params, prediction=False, t_chunk=4))
    y_ref = lstm_model_ref(x, params, prediction=False)
    assert y.shape == (B, 5)
    assert jnp.allclose(y, y_ref, atol=1e-5, rtol=1e-5)

    # prediction=True branch: y = max_t sigmoid(linear(out_t))
    y_p = jax.block_until_ready(
        lstm_model_forward(x, params, prediction=True, t_chunk=4))
    y_p_ref = lstm_model_ref(x, params, prediction=True)
    assert y_p.shape == (B, 5)
    assert jnp.allclose(y_p, y_p_ref, atol=1e-5, rtol=1e-5)

    print("KERNEL_OK")
</pallas_src>

<mosaic_0001>
module attributes {stable_mosaic.version = 11 : i64} {
  func.func @lstm_kernel(%arg0: i32, %arg1: memref<4x8x16xf32, #tpu.memory_space<vmem>>, %arg2: memref<16x512xf32, #tpu.memory_space<vmem>>, %arg3: memref<128x512xf32, #tpu.memory_space<vmem>>, %arg4: memref<1x512xf32, #tpu.memory_space<vmem>>, %arg5: memref<128x128xf32, #tpu.memory_space<vmem>>, %arg6: memref<1x128xf32, #tpu.memory_space<vmem>>, %arg7: memref<8x128xf32, #tpu.memory_space<vmem>>, %arg8: memref<8x128xf32, #tpu.memory_space<vmem>>, %arg9: memref<8x128xf32, #tpu.memory_space<vmem>>, %arg10: memref<8x128xf32, #tpu.memory_space<vmem>>) attributes {dimension_semantics = [#tpu.dimension_semantics<arbitrary>], iteration_bounds = array<i64: 2>, scalar_prefetch = 0 : i64, scratch_operands = 3 : i64, tpu.core_type = #tpu.core_type<tc>, window_params = [{transform_indices = @transform_0, window_bounds = array<i64: 4, 8, 16>}, {pipeline_mode = #tpu.pipeline_mode<synchronous>, transform_indices = @transform_1, window_bounds = array<i64: 16, 512>}, {pipeline_mode = #tpu.pipeline_mode<synchronous>, transform_indices = @transform_2, window_bounds = array<i64: 128, 512>}, {pipeline_mode = #tpu.pipeline_mode<synchronous>, transform_indices = @transform_3, window_bounds = array<i64: 1, 512>}, {pipeline_mode = #tpu.pipeline_mode<synchronous>, transform_indices = @transform_4, window_bounds = array<i64: 128, 128>}, {pipeline_mode = #tpu.pipeline_mode<synchronous>, transform_indices = @transform_5, window_bounds = array<i64: 1, 128>}, {pipeline_mode = #tpu.pipeline_mode<synchronous>, transform_indices = @transform_6, window_bounds = array<i64: 8, 128>}]} {
    %c0_i32 = arith.constant 0 : i32
    %0 = arith.cmpi eq, %arg0, %c0_i32 : i32
    %1 = arith.extui %0 : i1 to i32
    %c0_i32_0 = arith.constant 0 : i32
    %2 = arith.cmpi ne, %1, %c0_i32_0 : i32
    scf.if %2 {
      %cst_34 = arith.constant 0.000000e+00 : f32
      %135 = vector.broadcast %cst_34 : f32 to vector<8x128xf32>
      %c0_35 = arith.constant 0 : index
      %c0_36 = arith.constant 0 : index
      %136 = vector.load %arg8[%c0_35, %c0_36] : memref<8x128xf32, #tpu.memory_space<vmem>>, vector<8x128xf32>
      tpu.vector_store %arg8[%c0_35, %c0_36], %135 {strides = array<i32>} : memref<8x128xf32, #tpu.memory_space<vmem>>, vector<8x128xf32>,
      %cst_37 = arith.constant 0.000000e+00 : f32
      %137 = vector.broadcast %cst_37 : f32 to vector<8x128xf32>
      %c0_38 = arith.constant 0 : index
      %c0_39 = arith.constant 0 : index
      %138 = vector.load %arg9[%c0_38, %c0_39] : memref<8x128xf32, #tpu.memory_space<vmem>>, vector<8x128xf32>
      tpu.vector_store %arg9[%c0_38, %c0_39], %137 {strides = array<i32>} : memref<8x128xf32, #tpu.memory_space<vmem>>, vector<8x128xf32>,
    } else {
    }
    %c0 = arith.constant 0 : index
    %c0_1 = arith.constant 0 : index
    %c0_2 = arith.constant 0 : index
    %3 = vector.load %arg1[%c0, %c0_1, %c0_2] : memref<4x8x16xf32, #tpu.memory_space<vmem>>, vector<4x8x16xf32>
    %4 = vector.shape_cast %3 : vector<4x8x16xf32> to vector<32x16xf32>
    %c0_3 = arith.constant 0 : index
    %c0_4 = arith.constant 0 : index
    %5 = vector.load %arg2[%c0_3, %c0_4] : memref<16x512xf32, #tpu.memory_space<vmem>>, vector<16x512xf32>
    %cst = arith.constant dense<0.000000e+00> : vector<32x512xf32>
    %6 = tpu.matmul %4, %5, %cst {dimension_numbers = #tpu.dot_dimension_numbers<[1], [0], [0], [1], [0, 0, 1, 1], [], []>} : vector<32x16xf32>, vector<16x512xf32>, vector<32x512xf32> -> vector<32x512xf32>
    %c0_5 = arith.constant 0 : index
    %c0_6 = arith.constant 0 : index
    %7 = vector.load %arg4[%c0_5, %c0_6] : memref<1x512xf32, #tpu.memory_space<vmem>>, vector<1x512xf32>
    %8 = vector.broadcast %7 : vector<1x512xf32> to vector<32x512xf32>
    %9 = arith.addf %6, %8 : vector<32x512xf32>
    %10 = vector.shape_cast %9 : vector<32x512xf32> to vector<4x8x512xf32>
    %c0_7 = arith.constant 0 : index
    %c0_8 = arith.constant 0 : index
    %11 = vector.load %arg8[%c0_7, %c0_8] : memref<8x128xf32, #tpu.memory_space<vmem>>, vector<8x128xf32>
    %c0_9 = arith.constant 0 : index
    %c0_10 = arith.constant 0 : index
    %12 = vector.load %arg9[%c0_9, %c0_10] : memref<8x128xf32, #tpu.memory_space<vmem>>, vector<8x128xf32>
    %c0_11 = arith.constant 0 : index
    %c0_12 = arith.constant 0 : index
    %13 = vector.load %arg3[%c0_11, %c0_12] : memref<128x512xf32, #tpu.memory_space<vmem>>, vector<128x512xf32>
    %14 = vector.extract_strided_slice %10 {offsets = [0, 0, 0], sizes = [1, 8, 512], strides = [1, 1, 1]} : vector<4x8x512xf32> to vector<1x8x512xf32>
    %15 = vector.shape_cast %14 : vector<1x8x512xf32> to vector<8x512xf32>
    %cst_13 = arith.constant dense<0.000000e+00> : vector<8x512xf32>
    %16 = tpu.matmul %11, %13, %cst_13 {dimension_numbers = #tpu.dot_dimension_numbers<[1], [0], [0], [1], [0, 0, 1, 1], [], []>} : vector<8x128xf32>, vector<128x512xf32>, vector<8x512xf32> -> vector<8x512xf32>
    %17 = arith.addf %15, %16 : vector<8x512xf32>
    %18 = vector.extract_strided_slice %17 {offsets = [0, 0], sizes = [8, 128], strides = [1, 1]} : vector<8x512xf32> to vector<8x128xf32>
    %19 = arith.negf %18 : vector<8x128xf32>
    %20 = math.exp %19 : vector<8x128xf32>
    %cst_14 = arith.constant 1.000000e+00 : f32
    %21 = vector.broadcast %cst_14 : f32 to vector<8x128xf32>
    %22 = arith.addf %21, %20 : vector<8x128xf32>
    %23 = arith.divf %21, %22 : vector<8x128xf32>
    %24 = vector.extract_strided_slice %17 {offsets = [0, 128], sizes = [8, 128], strides = [1, 1]} : vector<8x512xf32> to vector<8x128xf32>
    %25 = arith.negf %24 : vector<8x128xf32>
    %26 = math.exp %25 : vector<8x128xf32>
    %cst_15 = arith.constant 1.000000e+00 : f32
    %27 = vector.broadcast %cst_15 : f32 to vector<8x128xf32>
    %28 = arith.addf %27, %26 : vector<8x128xf32>
    %29 = arith.divf %27, %28 : vector<8x128xf32>
    %30 = vector.extract_strided_slice %17 {offsets = [0, 256], sizes = [8, 128], strides = [1, 1]} : vector<8x512xf32> to vector<8x128xf32>
    %31 = math.tanh %30 : vector<8x128xf32>
    %32 = vector.extract_strided_slice %17 {offsets = [0, 384], sizes = [8, 128], strides = [1, 1]} : vector<8x512xf32> to vector<8x128xf32>
    %33 = arith.negf %32 : vector<8x128xf32>
    %34 = math.exp %33 : vector<8x128xf32>
    %cst_16 = arith.constant 1.000000e+00 : f32
    %35 = vector.broadcast %cst_16 : f32 to vector<8x128xf32>
    %36 = arith.addf %35, %34 : vector<8x128xf32>
    %37 = arith.divf %35, %36 : vector<8x128xf32>
    %38 = arith.mulf %29, %12 : vector<8x128xf32>
    %39 = arith.mulf %23, %31 : vector<8x128xf32>
    %40 = arith.addf %38, %39 : vector<8x128xf32>
    %41 = math.tanh %40 : vector<8x128xf32>
    %42 = arith.mulf %37, %41 : vector<8x128xf32>
    %43 = vector.extract_strided_slice %10 {offsets = [1, 0, 0], sizes = [1, 8, 512], strides = [1, 1, 1]} : vector<4x8x512xf32> to vector<1x8x512xf32>
    %44 = vector.shape_cast %43 : vector<1x8x512xf32> to vector<8x512xf32>
    %cst_17 = arith.constant dense<0.000000e+00> : vector<8x512xf32>
    %45 = tpu.matmul %42, %13, %cst_17 {dimension_numbers = #tpu.dot_dimension_numbers<[1], [0], [0], [1], [0, 0, 1, 1], [], []>} : vector<8x128xf32>, vector<128x512xf32>, vector<8x512xf32> -> vector<8x512xf32>
    %46 = arith.addf %44, %45 : vector<8x512xf32>
    %47 = vector.extract_strided_slice %46 {offsets = [0, 0], sizes = [8, 128], strides = [1, 1]} : vector<8x512xf32> to vector<8x128xf32>
    %48 = arith.negf %47 : vector<8x128xf32>
    %49 = math.exp %48 : vector<8x128xf32>
    %cst_18 = arith.constant 1.000000e+00 : f32
    %50 = vector.broadcast %cst_18 : f32 to vector<8x128xf32>
    %51 = arith.addf %50, %49 : vector<8x128xf32>
    %52 = arith.divf %50, %51 : vector<8x128xf32>
    %53 = vector.extract_strided_slice %46 {offsets = [0, 128], sizes = [8, 128], strides = [1, 1]} : vector<8x512xf32> to vector<8x128xf32>
    %54 = arith.negf %53 : vector<8x128xf32>
    %55 = math.exp %54 : vector<8x128xf32>
    %cst_19 = arith.constant 1.000000e+00 : f32
    %56 = vector.broadcast %cst_19 : f32 to vector<8x128xf32>
    %57 = arith.addf %56, %55 : vector<8x128xf32>
    %58 = arith.divf %56, %57 : vector<8x128xf32>
    %59 = vector.extract_strided_slice %46 {offsets = [0, 256], sizes = [8, 128], strides = [1, 1]} : vector<8x512xf32> to vector<8x128xf32>
    %60 = math.tanh %59 : vector<8x128xf32>
    %61 = vector.extract_strided_slice %46 {offsets = [0, 384], sizes = [8, 128], strides = [1, 1]} : vector<8x512xf32> to vector<8x128xf32>
    %62 = arith.negf %61 : vector<8x128xf32>
    %63 = math.exp %62 : vector<8x128xf32>
    %cst_20 = arith.constant 1.000000e+00 : f32
    %64 = vector.broadcast %cst_20 : f32 to vector<8x128xf32>
    %65 = arith.addf %64, %63 : vector<8x128xf32>
    %66 = arith.divf %64, %65 : vector<8x128xf32>
    %67 = arith.mulf %58, %40 : vector<8x128xf32>
    %68 = arith.mulf %52, %60 : vector<8x128xf32>
    %69 = arith.addf %67, %68 : vector<8x128xf32>
    %70 = math.tanh %69 : vector<8x128xf32>
    %71 = arith.mulf %66, %70 : vector<8x128xf32>
    %72 = vector.extract_strided_slice %10 {offsets = [2, 0, 0], sizes = [1, 8, 512], strides = [1, 1, 1]} : vector<4x8x512xf32> to vector<1x8x512xf32>
    %73 = vector.shape_cast %72 : vector<1x8x512xf32> to vector<8x512xf32>
    %cst_21 = arith.constant dense<0.000000e+00> : vector<8x512xf32>
    %74 = tpu.matmul %71, %13, %cst_21 {dimension_numbers = #tpu.dot_dimension_numbers<[1], [0], [0], [1], [0, 0, 1, 1], [], []>} : vector<8x128xf32>, vector<128x512xf32>, vector<8x512xf32> -> vector<8x512xf32>
    %75 = arith.addf %73, %74 : vector<8x512xf32>
    %76 = vector.extract_strided_slice %75 {offsets = [0, 0], sizes = [8, 128], strides = [1, 1]} : vector<8x512xf32> to vector<8x128xf32>
    %77 = arith.negf %76 : vector<8x128xf32>
    %78 = math.exp %77 : vector<8x128xf32>
    %cst_22 = arith.constant 1.000000e+00 : f32
    %79 = vector.broadcast %cst_22 : f32 to vector<8x128xf32>
    %80 = arith.addf %79, %78 : vector<8x128xf32>
    %81 = arith.divf %79, %80 : vector<8x128xf32>
    %82 = vector.extract_strided_slice %75 {offsets = [0, 128], sizes = [8, 128], strides = [1, 1]} : vector<8x512xf32> to vector<8x128xf32>
    %83 = arith.negf %82 : vector<8x128xf32>
    %84 = math.exp %83 : vector<8x128xf32>
    %cst_23 = arith.constant 1.000000e+00 : f32
    %85 = vector.broadcast %cst_23 : f32 to vector<8x128xf32>
    %86 = arith.addf %85, %84 : vector<8x128xf32>
    %87 = arith.divf %85, %86 : vector<8x128xf32>
    %88 = vector.extract_strided_slice %75 {offsets = [0, 256], sizes = [8, 128], strides = [1, 1]} : vector<8x512xf32> to vector<8x128xf32>
    %89 = math.tanh %88 : vector<8x128xf32>
    %90 = vector.extract_strided_slice %75 {offsets = [0, 384], sizes = [8, 128], strides = [1, 1]} : vector<8x512xf32> to vector<8x128xf32>
    %91 = arith.negf %90 : vector<8x128xf32>
    %92 = math.exp %91 : vector<8x128xf32>
    %cst_24 = arith.constant 1.000000e+00 : f32
    %93 = vector.broadcast %cst_24 : f32 to vector<8x128xf32>
    %94 = arith.addf %93, %92 : vector<8x128xf32>
    %95 = arith.divf %93, %94 : vector<8x128xf32>
    %96 = arith.mulf %87, %69 : vector<8x128xf32>
    %97 = arith.mulf %81, %89 : vector<8x128xf32>
    %98 = arith.addf %96, %97 : vector<8x128xf32>
    %99 = math.tanh %98 : vector<8x128xf32>
    %100 = arith.mulf %95, %99 : vector<8x128xf32>
    %101 = vector.extract_strided_slice %10 {offsets = [3, 0, 0], sizes = [1, 8, 512], strides = [1, 1, 1]} : vector<4x8x512xf32> to vector<1x8x512xf32>
    %102 = vector.shape_cast %101 : vector<1x8x512xf32> to vector<8x512xf32>
    %cst_25 = arith.constant dense<0.000000e+00> : vector<8x512xf32>
    %103 = tpu.matmul %100, %13, %cst_25 {dimension_numbers = #tpu.dot_dimension_numbers<[1], [0], [0], [1], [0, 0, 1, 1], [], []>} : vector<8x128xf32>, vector<128x512xf32>, vector<8x512xf32> -> vector<8x512xf32>
    %104 = arith.addf %102, %103 : vector<8x512xf32>
    %105 = vector.extract_strided_slice %104 {offsets = [0, 0], sizes = [8, 128], strides = [1, 1]} : vector<8x512xf32> to vector<8x128xf32>
    %106 = arith.negf %105 : vector<8x128xf32>
    %107 = math.exp %106 : vector<8x128xf32>
    %cst_26 = arith.constant 1.000000e+00 : f32
    %108 = vector.broadcast %cst_26 : f32 to vector<8x128xf32>
    %109 = arith.addf %108, %107 : vector<8x128xf32>
    %110 = arith.divf %108, %109 : vector<8x128xf32>
    %111 = vector.extract_strided_slice %104 {offsets = [0, 128], sizes = [8, 128], strides = [1, 1]} : vector<8x512xf32> to vector<8x128xf32>
    %112 = arith.negf %111 : vector<8x128xf32>
    %113 = math.exp %112 : vector<8x128xf32>
    %cst_27 = arith.constant 1.000000e+00 : f32
    %114 = vector.broadcast %cst_27 : f32 to vector<8x128xf32>
    %115 = arith.addf %114, %113 : vector<8x128xf32>
    %116 = arith.divf %114, %115 : vector<8x128xf32>
    %117 = vector.extract_strided_slice %104 {offsets = [0, 256], sizes = [8, 128], strides = [1, 1]} : vector<8x512xf32> to vector<8x128xf32>
    %118 = math.tanh %117 : vector<8x128xf32>
    %119 = vector.extract_strided_slice %104 {offsets = [0, 384], sizes = [8, 128], strides = [1, 1]} : vector<8x512xf32> to vector<8x128xf32>
    %120 = arith.negf %119 : vector<8x128xf32>
    %121 = math.exp %120 : vector<8x128xf32>
    %cst_28 = arith.constant 1.000000e+00 : f32
    %122 = vector.broadcast %cst_28 : f32 to vector<8x128xf32>
    %123 = arith.addf %122, %121 : vector<8x128xf32>
    %124 = arith.divf %122, %123 : vector<8x128xf32>
    %125 = arith.mulf %116, %98 : vector<8x128xf32>
    %126 = arith.mulf %110, %118 : vector<8x128xf32>
    %127 = arith.addf %125, %126 : vector<8x128xf32>
    %128 = math.tanh %127 : vector<8x128xf32>
    %129 = arith.mulf %124, %128 : vector<8x128xf32>
    %c0_29 = arith.constant 0 : index
    %c0_30 = arith.constant 0 : index
    %130 = vector.load %arg8[%c0_29, %c0_30] : memref<8x128xf32, #tpu.memory_space<vmem>>, vector<8x128xf32>
    tpu.vector_store %arg8[%c0_29, %c0_30], %129 {strides = array<i32>} : memref<8x128xf32, #tpu.memory_space<vmem>>, vector<8x128xf32>,
    %c0_31 = arith.constant 0 : index
    %c0_32 = arith.constant 0 : index
    %131 = vector.load %arg9[%c0_31, %c0_32] : memref<8x128xf32, #tpu.memory_space<vmem>>, vector<8x128xf32>
    tpu.vector_store %arg9[%c0_31, %c0_32], %127 {strides = array<i32>} : memref<8x128xf32, #tpu.memory_space<vmem>>, vector<8x128xf32>,
    %c1_i32 = arith.constant 1 : i32
    %132 = arith.cmpi eq, %arg0, %c1_i32 : i32
    %133 = arith.extui %132 : i1 to i32
    %c0_i32_33 = arith.constant 0 : i32
    %134 = arith.cmpi ne, %133, %c0_i32_33 : i32
    scf.if %134 {
      %c0_34 = arith.constant 0 : index
      %c0_35 = arith.constant 0 : index
      %135 = vector.load %arg5[%c0_34, %c0_35] : memref<128x128xf32, #tpu.memory_space<vmem>>, vector<128x128xf32>
      %cst_36 = arith.constant dense<0.000000e+00> : vector<8x128xf32>
      %136 = tpu.matmul %129, %135, %cst_36 {dimension_numbers = #tpu.dot_dimension_numbers<[1], [0], [0], [1], [0, 0, 1, 1], [], []>} : vector<8x128xf32>, vector<128x128xf32>, vector<8x128xf32> -> vector<8x128xf32>
      %c0_37 = arith.constant 0 : index
      %c0_38 = arith.constant 0 : index
      %137 = vector.load %arg6[%c0_37, %c0_38] : memref<1x128xf32, #tpu.memory_space<vmem>>, vector<1x128xf32>
      %138 = vector.broadcast %137 : vector<1x128xf32> to vector<8x128xf32>
      %139 = arith.addf %136, %138 : vector<8x128xf32>
      %140 = arith.negf %139 : vector<8x128xf32>
      %141 = math.exp %140 : vector<8x128xf32>
      %cst_39 = arith.constant 1.000000e+00 : f32
      %142 = vector.broadcast %cst_39 : f32 to vector<8x128xf32>
      %143 = arith.addf %142, %141 : vector<8x128xf32>
      %144 = arith.divf %142, %143 : vector<8x128xf32>
      %c0_40 = arith.constant 0 : index
      %c0_41 = arith.constant 0 : index
      %145 = vector.load %arg7[%c0_40, %c0_41] : memref<8x128xf32, #tpu.memory_space<vmem>>, vector<8x128xf32>
      tpu.vector_store %arg7[%c0_40, %c0_41], %144 {strides = array<i32>} : memref<8x128xf32, #tpu.memory_space<vmem>>, vector<8x128xf32>,
    } else {
    }
    return
  }
  func.func @transform_0(%arg0: i32) -> (i32, i32, i32) {
    %c0_i32 = arith.constant 0 : i32
    %c0_i32_0 = arith.constant 0 : i32
    %c0_i32_1 = arith.constant 0 : i32
    return %arg0, %c0_i32, %c0_i32_0 : i32, i32, i32
  }
  func.func @transform_1(%arg0: i32) -> (i32, i32) {
    %c0_i32 = arith.constant 0 : i32
    %c0_i32_0 = arith.constant 0 : i32
    %c0_i32_1 = arith.constant 0 : i32
    return %c0_i32, %c0_i32_0 : i32, i32
  }
  func.func @transform_2(%arg0: i32) -> (i32, i32) {
    %c0_i32 = arith.constant 0 : i32
    %c0_i32_0 = arith.constant 0 : i32
    %c0_i32_1 = arith.constant 0 : i32
    return %c0_i32, %c0_i32_0 : i32, i32
  }
  func.func @transform_3(%arg0: i32) -> (i32, i32) {
    %c0_i32 = arith.constant 0 : i32
    %c0_i32_0 = arith.constant 0 : i32
    %c0_i32_1 = arith.constant 0 : i32
    return %c0_i32, %c0_i32_0 : i32, i32
  }
  func.func @transform_4(%arg0: i32) -> (i32, i32) {
    %c0_i32 = arith.constant 0 : i32
    %c0_i32_0 = arith.constant 0 : i32
    %c0_i32_1 = arith.constant 0 : i32
    return %c0_i32, %c0_i32_0 : i32, i32
  }
  func.func @transform_5(%arg0: i32) -> (i32, i32) {
    %c0_i32 = arith.constant 0 : i32
    %c0_i32_0 = arith.constant 0 : i32
    %c0_i32_1 = arith.constant 0 : i32
    return %c0_i32, %c0_i32_0 : i32, i32
  }
  func.func @transform_6(%arg0: i32) -> (i32, i32) {
    %c0_i32 = arith.constant 0 : i32
    %c0_i32_0 = arith.constant 0 : i32
    %c0_i32_1 = arith.constant 0 : i32
    return %c0_i32, %c0_i32_0 : i32, i32
  }
}

</mosaic_0001>

<bundles_post_ra>
// kernel: tpu_custom_call.1
= control target key start
LH: loop header
LB: loop body
LE: loop exit
PB: predicated region body
PF: predicated region fallthrough
CT: control target
= control target key end

     0   :  { %11 = vsyncpa [#allocation6], 0  ;;  %s2377_s0 = inlined_call_operand.hbm [shape: f32[8,8,16], index: 0, kind: input, shape index: {}]   ;;  %s2378_s1 = inlined_call_operand.hbm [shape: f32[16,512], index: 1, kind: input, shape index: {}]   ;;  %s2379_s2 = inlined_call_operand.hbm [shape: f32[128,512], index: 2, kind: input, shape index: {}]   ;;  %s2380_s3 = inlined_call_operand.hbm [shape: f32[1,512], index: 3, kind: input, shape index: {}]   ;;  %s2381_s4 = inlined_call_operand.hbm [shape: f32[128,128], index: 4, kind: input, shape index: {}]   ;;  %s2382_s5 = inlined_call_operand.vmem [shape: f32[1,128], index: 5, kind: input, shape index: {}]   ;;  %s2383_s6 = inlined_call_operand.hbm [shape: f32[8,128], index: 6, kind: output, shape index: {}]  }
   0x1   :  { %13 = vsyncpa [#allocation6 + $0x1], 0 }
   0x2   :  { %14 = vsyncpa [#allocation9], 0 }
   0x3   :  { %15 = vsyncpa [#allocation12], 0 }
   0x4   :  { %16 = vsyncpa [#allocation7], 0  ;;  %s1783_s21 = smov 0   ;;  %s1785_s22 = smov 0  }
   0x5   :  { %s1787_s23 = smov 0   ;;  %s1789_s24 = smov 0  }
   0x6 LB: > { %s1802_s25 = sadd.s32 4294967295, %s1736_s24   ;;  %p42_p0 = scmp.ne.s32.totalorder %s1728_s22, %s1724_s21  ;;  %s1736_s24 = sphi %s1789_s24, %s2496_s24   ;;  %s1732_s23 = sphi %s1787_s23, %s2495_s23   ;;  %s1728_s22 = sphi %s1785_s22, %s2494_s22   ;;  %s1724_s21 = sphi %s1783_s21, %s2493_s21  }
   0x7   : > { %p43_p1 = scmp.eq.s32.totalorder %s1802_s25, 0  ;;  %p1300_p2 = scmp.ge.s32.totalorder %s1736_s24, 1 }
   0x8   : > { %p179_p3 = scmp.lt.s32.totalorder %s1736_s24, 3  ;;  %p1301_p4 = scmp.ne.s32.totalorder %s1802_s25, 0 }
   0x9   : > { %p1811_p5 = por %p43_p1, %p42_p0  ;;  %s190_s29 = sshll.u32 %s2378_s1, 4  ;;  %s191_s29 = int_to_ptr.hbm [resolvable:$true] %s190_s29 }
   0xa   : > { %p1818_p6 = pnand %p1300_p2, %p179_p3  ;;  %s1738_s7 = smov [#allocation8]  }
   0xb   : > { %s192_s8 = sshll.u32 %s1738_s7, 4  ;;  %s219_s12 = sshll.u32 %s2380_s3, 4  ;;  %s193_s8 = int_to_ptr.vmem [resolvable:$true] %s192_s8  ;;  %s220_s12 = int_to_ptr.hbm [resolvable:$true] %s219_s12 }
   0xc   : > { %p1373_p7 = pneg %p1818_p6  ;;  %s1739_s13 = smov 512  }
   0xd   : > { %s1740_s14 = smov 32   ;;  %s1741_s15 = smov [#allocation11]  }
   0xe   : > { %p1826_p8 = pnand %p1373_p7, %p43_p1  ;;  %s221_s16 = sshll.u32 %s1741_s15, 4  ;;  %s222_s16 = int_to_ptr.vmem [resolvable:$true] %s221_s16 }
   0xf   : > { %s204_s19 = sshll.u32 %s2379_s2, 4  ;;  %s230_s27 = sshll.u32 %s2381_s4, 4  ;;  %s205_s19 = int_to_ptr.hbm [resolvable:$true] %s204_s19  ;;  %s231_s27 = int_to_ptr.hbm [resolvable:$true] %s230_s27 }
  0x10   : > { %1376 = dma.hbm_to_vmem [thread:$0]  (!%p1826_p8), %s191_s29, 1024, %s193_s8, [#allocation9], %s1739_s13, %s1739_s13, %s1740_s14  }
  0x11   : > { %1382 = dma.hbm_to_vmem [thread:$0]  (!%p1826_p8), %s220_s12, 64, %s222_s16, [#allocation12]  }
  0x12   : > { %s1742_s28 = smov [#allocation10]   ;;  %s1743_s7 = smov [#allocation13]  }
  0x13   : > { %s206_s29 = sshll.u32 %s1742_s28, 4  ;;  %s232_s8 = sshll.u32 %s1743_s7, 4  ;;  %s207_s29 = int_to_ptr.vmem [resolvable:$true] %s206_s29  ;;  %s233_s8 = int_to_ptr.vmem [resolvable:$true] %s232_s8 }
  0x14   : > { %1379 = dma.hbm_to_vmem [thread:$0]  (!%p1826_p8), %s205_s19, 8192, %s207_s29, [#allocation9], %s1739_s13, %s1739_s13, %s1740_s14  }
  0x15   : > { %s1744_s10 = smov 128   ;;  %s1745_s11 = smov 8  }
  0x16   : > { %1385 = dma.hbm_to_vmem [thread:$0]  (!%p1826_p8), %s231_s27, 2048, %s233_s8, [#allocation12], %s1744_s10, %s1744_s10, %s1745_s11  }
  0x17   : > { %s1851_s12 = sadd.s32 1, %s1736_s24   ;;  %s29_s16 = sadd.s32 1, %s1732_s23 }
  0x18   : > { %s26_s15 = ssub.s32 %s1736_s24, %s1851_s12  ;;  %p36_p10 = scmp.ne.s32.totalorder %s1732_s23, %s1728_s22 }
  0x19   : > { %p27_p9 = scmp.eq.s32.totalorder %s26_s15, 0  ;;  %p37_p11 = scmp.eq.s32.totalorder %s1736_s24, 0 }
  0x1a   : > { %s249_s14 = sand.u32 1, %s1732_s23   ;;  %s1350_s17 = sshll.u32 %s1736_s24, 5 }
  0x1b   : > { %s1860_s13 = scalar_select %p27_p9, %s1732_s23, %s29_s16  }
  0x1c   : > { %p38_p12 = por %p37_p11, %p36_p10  ;;  %p1394_p13 = scmp.lt.s32.totalorder %s1736_s24, 2 }
  0x1d   : > { %s1306_s18 = sshll.u32 %s249_s14, 5  ;;  %s258_s20 = scalar_lea.hbm %s2377_s0, %s1350_s17 }
  0x1e   : > { %s259_s21 = sshll.u32 %s258_s20, 4  ;;  %s253_s27 = scalar_lea.vmem [#allocation5], %s1306_s18  ;;  %s260_s21 = int_to_ptr.hbm [resolvable:$true] %s259_s21 }
  0x1f   : > { %s261_s28 = sshll.u32 %s253_s27, 4  ;;  %p1868_p0 = pnand %p1394_p13, %p38_p12  ;;  %s262_s28 = int_to_ptr.vmem [resolvable:$true] %s261_s28 }
  0x20   : > { %s250_s7 = scalar_lea.sflag [#allocation6], %s249_s14  ;;  %s1632_s8 = sshra.s32 %s260_s21, 4  ;;  %s1633_s8 = int_to_ptr.hbm [resolvable:$true] %s1632_s8 }
  0x21   : > { %s1634_s15 = scalar_lea.hbm %s1633_s8, 32  ;;  %p1636_p3 = pneg %p1868_p0 }
  0x22   : > { %p1635_p2 = scmp.ne.s32.totalorder %s1633_s8, %s1634_s15  ;;  %s1639_s17 = scalar_lea.hbm %s2377_s0, 64 }
  0x23   : > { %p1640_p9 = scmp.lt.s32.totalorder %s1633_s8, %s2377_s0  ;;  %p1641_p10 = scmp.lt.s32.totalorder %s1639_s17, %s1634_s15 }
  0x24   : > { %p1637_p7 = pnand %p1636_p3, %p1635_p2 }
  0x25   : > { %p1642_p11 = por %p1641_p10, %p1640_p9 }
  0x26   : > { %p1638_p8 = pneg %p1637_p7 }
  0x28   : > { %p1643_p12 = pnand %p1642_p11, %p1638_p8 }
  0x2a   : > { %1646 = shalt.err (!%p1643_p12)
}
  0x2b   : > { %1389 = dma.hbm_to_vmem [thread:$0]  (!%p1868_p0), %s260_s21, 512, %s262_s28, %s250_s7, %s1744_s10, %s1744_s10, %s1745_s11  }
  0x2c   : > { %273 = sbr.rel (%p1818_p6) target bundleno = 985 (0x3d9), region = 44 }
  0x31   : > { %s275_s14 = sand.u32 1, %s1728_s22  }
  0x32   : > { %s1310_s19 = sshll.u32 %s275_s14, 5  ;;  %s276_s20 = scalar_lea.sflag [#allocation6], %s275_s14 }
  0x33   : > { %s1888_s27 = scalar_lea.vmem [#allocation5], %s1310_s19 }
  0x34   : > { %1707 = dma.done.wait (%p1811_p5), %s276_s20, 512  }
  0x35   : > { %1709 = vsyncadd (%p1811_p5), %s276_s20, 4294966784 }
  0x36   : > { %1711 = dma.done.wait (%p43_p1), [#allocation9], 9216  }
  0x37   : > { %1713 = vsyncadd (%p43_p1), [#allocation9], 4294958080 }
  0x38   : > { %1715 = dma.done.wait (%p43_p1), [#allocation12], 2112  }
  0x39   : > { %1717 = vsyncadd (%p43_p1), [#allocation12], 4294965184  ;;  %328 = sbr.rel (%p1301_p4) target bundleno = 65 (0x41), region = 68 }
  0x3e   : > { %v1746_v0 = vmov 0.0  }
  0x3f   : > { %329 = vst [vmem:[#allocation2] sm:$0xff] %v1746_v0 }
  0x40   : > { %330 = vst [vmem:[#allocation3] sm:$0xff] %v1746_v0 }
  0x41 PF: > { %v339_v1 = vld [vmem:[#allocation8 + $0x20] sm:$0xff]  ;;  %v340_v2 = vld [vmem:[#allocation8 + $0x28] sm:$0xff]  ;;  %v341_v3 = vld [vmem:[#allocation8 + $0x30] sm:$0xff]  ;;  %vm353_vm0 = vcmask 130048   ;;  %p1344_p1 = scmp.ne.s32.totalorder %s1802_s25, 1 }
  0x42   : > { %380 = vmatpush.msra.mxu0 %v339_v1  ;;  %409 = vmatpush.msra.mxu1 %v340_v2  ;;  %v342_v4 = vld [vmem:[#allocation8 + $0x38] sm:$0xff]  ;;  %v335_v5 = vld [vmem:[#allocation8] sm:$0xff]  ;;  %v336_v6 = vld [vmem:[#allocation8 + $0x8] sm:$0xff] }
  0x43   : > { %438 = vmatpush.msra.mxu2 %v341_v3  ;;  %467 = vmatpush.msra.mxu3 %v342_v4  ;;  %v337_v7 = vld [vmem:[#allocation8 + $0x10] sm:$0xff]  ;;  %v338_v8 = vld [vmem:[#allocation8 + $0x18] sm:$0xff]  ;;  %v331_v9 = vld [vmem:[%s1888_s27] sm:$0xff] }
  0x44   : > { %381 = vmatpush.msra.mxu0 %v335_v5  ;;  %410 = vmatpush.msra.mxu1 %v336_v6  ;;  %v1905_v10 = vld [vmem:[#allocation10 + $0x1e0] sm:$0xff]  ;;  %v1907_v11 = vld [vmem:[#allocation10 + $0x1e8] sm:$0xff]  ;;  %v1911_v12 = vld [vmem:[#allocation10 + $0x1f0] sm:$0xff] }
  0x45   : > { %439 = vmatpush.msra.mxu2 %v337_v7  ;;  %468 = vmatpush.msra.mxu3 %v338_v8  ;;  %v1913_v13 = vld [vmem:[#allocation10 + $0x1f8] sm:$0xff]  ;;  %v1917_v14 = vld [vmem:[#allocation10 + $0x1c0] sm:$0xff]  ;;  %v1919_v15 = vld [vmem:[#allocation10 + $0x1c8] sm:$0xff] }
  0x46   : > { %1316 = vmatmul.msk.f32.vlgmr.msra.gmra.mxu0 %vm353_vm0, %v331_v9  ;;  %1320 = vmatmul.msk.f32.vlgmr.msra.gmra.mxu1 %vm353_vm0, %v331_v9  ;;  %v1923_v16 = vld [vmem:[#allocation10 + $0x1d0] sm:$0xff]  ;;  %v1925_v17 = vld [vmem:[#allocation10 + $0x1d8] sm:$0xff]  ;;  %v1929_v18 = vld [vmem:[#allocation10 + $0x1a0] sm:$0xff] }
  0x47   : > { %1324 = vmatmul.msk.f32.vlgmr.msra.gmra.mxu2 %vm353_vm0, %v331_v9  ;;  %1328 = vmatmul.msk.f32.vlgmr.msra.gmra.mxu3 %vm353_vm0, %v331_v9  ;;  %v1931_v19 = vld [vmem:[#allocation10 + $0x1a8] sm:$0xff]  ;;  %v1935_v20 = vld [vmem:[#allocation10 + $0x1b0] sm:$0xff]  ;;  %v1937_v21 = vld [vmem:[#allocation10 + $0x1b8] sm:$0xff] }
  0x48   : > { %548 = vmatpush.msrb.mxu0 %v1905_v10  ;;  %568 = vmatpush.msrb.mxu1 %v1907_v11  ;;  %v1941_v22 = vld [vmem:[#allocation10 + $0x180] sm:$0xff]  ;;  %v1943_v23 = vld [vmem:[#allocation10 + $0x188] sm:$0xff]  ;;  %v1947_v24 = vld [vmem:[#allocation10 + $0x190] sm:$0xff] }
  0x49   : > { %588 = vmatpush.msrb.mxu2 %v1911_v12  ;;  %608 = vmatpush.msrb.mxu3 %v1913_v13  ;;  %v1949_v25 = vld [vmem:[#allocation10 + $0x198] sm:$0xff]  ;;  %v332_v26 = vld [vmem:[%s1888_s27 + $0x8] sm:$0xff]  ;;  %v1958_v27 = vld [vmem:[#allocation10 + $0x160] sm:$0xff] }
  0x4a   : > { %549 = vmatpush.msrb.mxu0 %v1917_v14  ;;  %569 = vmatpush.msrb.mxu1 %v1919_v15  ;;  %v1960_v28 = vld [vmem:[#allocation10 + $0x168] sm:$0xff]  ;;  %v1964_v29 = vld [vmem:[#allocation10 + $0x170] sm:$0xff]  ;;  %v1966_v30 = vld [vmem:[#allocation10 + $0x178] sm:$0xff] }
  0x4b   : > { %589 = vmatpush.msrb.mxu2 %v1923_v16  ;;  %609 = vmatpush.msrb.mxu3 %v1925_v17  ;;  %v1970_v31 = vld [vmem:[#allocation10 + $0x140] sm:$0xff]  ;;  %v1972_v32 = vld [vmem:[#allocation10 + $0x148] sm:$0xff]  ;;  %v1976_v33 = vld [vmem:[#allocation10 + $0x150] sm:$0xff] }
  0x4c   : > { %550 = vmatpush.msrb.mxu0 %v1929_v18  ;;  %570 = vmatpush.msrb.mxu1 %v1931_v19  ;;  %v1978_v34 = vld [vmem:[#allocation10 + $0x158] sm:$0xff]  ;;  %v1982_v35 = vld [vmem:[#allocation10 + $0x120] sm:$0xff]  ;;  %v1984_v36 = vld [vmem:[#allocation10 + $0x128] sm:$0xff] }
  0x4d   : > { %590 = vmatpush.msrb.mxu2 %v1935_v20  ;;  %610 = vmatpush.msrb.mxu3 %v1937_v21  ;;  %v1988_v37 = vld [vmem:[#allocation10 + $0x130] sm:$0xff]  ;;  %v1990_v38 = vld [vmem:[#allocation10 + $0x138] sm:$0xff]  ;;  %v1994_v39 = vld [vmem:[#allocation10 + $0x100] sm:$0xff] }
  0x4e   : > { %551 = vmatpush.msrb.mxu0 %v1941_v22  ;;  %571 = vmatpush.msrb.mxu1 %v1943_v23  ;;  %v1996_v40 = vld [vmem:[#allocation10 + $0x108] sm:$0xff]  ;;  %v2000_v41 = vld [vmem:[#allocation10 + $0x110] sm:$0xff]  ;;  %v2002_v42 = vld [vmem:[#allocation10 + $0x118] sm:$0xff] }
  0x4f   : > { %591 = vmatpush.msrb.mxu2 %v1947_v24  ;;  %611 = vmatpush.msrb.mxu3 %v1949_v25  ;;  %v333_v43 = vld [vmem:[%s1888_s27 + $0x10] sm:$0xff]  ;;  %v2011_v44 = vld [vmem:[#allocation10 + $0xe0] sm:$0xff]  ;;  %v2013_v45 = vld [vmem:[#allocation10 + $0xe8] sm:$0xff] }
  0x50   : > { %1317 = vmatmul.msk.f32.gmra.mxu0 %vm353_vm0, %v332_v26  ;;  %1321 = vmatmul.msk.f32.gmra.mxu1 %vm353_vm0, %v332_v26  ;;  %v2017_v46 = vld [vmem:[#allocation10 + $0xf0] sm:$0xff]  ;;  %v2019_v47 = vld [vmem:[#allocation10 + $0xf8] sm:$0xff]  ;;  %v2023_v48 = vld [vmem:[#allocation10 + $0xc0] sm:$0xff] }
  0x51   : > { %1325 = vmatmul.msk.f32.gmra.mxu2 %vm353_vm0, %v332_v26  ;;  %1329 = vmatmul.msk.f32.gmra.mxu3 %vm353_vm0, %v332_v26  ;;  %v2025_v49 = vld [vmem:[#allocation10 + $0xc8] sm:$0xff]  ;;  %v2029_v50 = vld [vmem:[#allocation10 + $0xd0] sm:$0xff]  ;;  %v2031_v51 = vld [vmem:[#allocation10 + $0xd8] sm:$0xff] }
  0x52   : > { %552 = vmatpush.msrb.mxu0 %v1958_v27  ;;  %572 = vmatpush.msrb.mxu1 %v1960_v28  ;;  %2416 = vst [vmem:[#allocation19_spill] sm:$0xff] %v2029_v50  ;;  %v2035_v52 = vld [vmem:[#allocation10 + $0xa0] sm:$0xff]  ;;  %v2037_v53 = vld [vmem:[#allocation10 + $0xa8] sm:$0xff]  ;;  %v2041_v54 = vld [vmem:[#allocation10 + $0xb0] sm:$0xff] }
  0x53   : > { %592 = vmatpush.msrb.mxu2 %v1964_v29  ;;  %612 = vmatpush.msrb.mxu3 %v1966_v30  ;;  %2417 = vst [vmem:[#allocation20_spill] sm:$0xff] %v2031_v51  ;;  %v2043_v55 = vld [vmem:[#allocation10 + $0xb8] sm:$0xff]  ;;  %v2047_v56 = vld [vmem:[#allocation10 + $0x80] sm:$0xff]  ;;  %v2049_v57 = vld [vmem:[#allocation10 + $0x88] sm:$0xff] }
  0x54   : > { %553 = vmatpush.msrb.mxu0 %v1970_v31  ;;  %573 = vmatpush.msrb.mxu1 %v1972_v32  ;;  %2418 = vst [vmem:[#allocation21_spill] sm:$0xff] %v2035_v52  ;;  %v2053_v58 = vld [vmem:[#allocation10 + $0x90] sm:$0xff]  ;;  %v2055_v59 = vld [vmem:[#allocation10 + $0x98] sm:$0xff]  ;;  %v2064_v61 = vld [vmem:[#allocation10 + $0x60] sm:$0xff] }
  0x55   : > { %593 = vmatpush.msrb.mxu2 %v1976_v33  ;;  %613 = vmatpush.msrb.mxu3 %v1978_v34  ;;  %2419 = vst [vmem:[#allocation22_spill] sm:$0xff] %v2037_v53  ;;  %v334_v60 = vld [vmem:[%s1888_s27 + $0x18] sm:$0xff]  ;;  %v2066_v62 = vld [vmem:[#allocation10 + $0x68] sm:$0xff]  ;;  %v2070_v63 = vld [vmem:[#allocation10 + $0x70] sm:$0xff] }
  0x56   : > { %554 = vmatpush.msrb.mxu0 %v1982_v35  ;;  %574 = vmatpush.msrb.mxu1 %v1984_v36  ;;  %2420 = vst [vmem:[#allocation23_spill] sm:$0xff] %v2041_v54  ;;  %v2072_v0 = vld [vmem:[#allocation10 + $0x78] sm:$0xff]  ;;  %v2076_v1 = vld [vmem:[#allocation10 + $0x40] sm:$0xff]  ;;  %v2078_v2 = vld [vmem:[#allocation10 + $0x48] sm:$0xff] }
  0x57   : > { %594 = vmatpush.msrb.mxu2 %v1988_v37  ;;  %614 = vmatpush.msrb.mxu3 %v1990_v38  ;;  %2421 = vst [vmem:[#allocation24_spill] sm:$0xff] %v2043_v55  ;;  %v2082_v3 = vld [vmem:[#allocation10 + $0x50] sm:$0xff]  ;;  %v2084_v4 = vld [vmem:[#allocation10 + $0x58] sm:$0xff]  ;;  %v2088_v5 = vld [vmem:[#allocation10 + $0x20] sm:$0xff] }
  0x58   : > { %555 = vmatpush.msrb.mxu0 %v1994_v39  ;;  %575 = vmatpush.msrb.mxu1 %v1996_v40  ;;  %2422 = vst [vmem:[#allocation25_spill] sm:$0xff] %v2047_v56  ;;  %v2090_v6 = vld [vmem:[#allocation10 + $0x28] sm:$0xff]  ;;  %v2094_v7 = vld [vmem:[#allocation10 + $0x30] sm:$0xff]  ;;  %v2096_v8 = vld [vmem:[#allocation10 + $0x38] sm:$0xff] }
  0x59   : > { %595 = vmatpush.msrb.mxu2 %v2000_v41  ;;  %615 = vmatpush.msrb.mxu3 %v2002_v42  ;;  %2423 = vst [vmem:[#allocation26_spill] sm:$0xff] %v2049_v57  ;;  %v2100_v9 = vld [vmem:[#allocation10] sm:$0xff]  ;;  %v2102_v26 = vld [vmem:[#allocation10 + $0x8] sm:$0xff] }
  0x5a   : > { %1318 = vmatmul.msk.f32.gmra.mxu0 %vm353_vm0, %v333_v43  ;;  %1322 = vmatmul.msk.f32.gmra.mxu1 %vm353_vm0, %v333_v43  ;;  %2424 = vst [vmem:[#allocation27_spill] sm:$0xff] %v2053_v58 }
  0x5b   : > { %1326 = vmatmul.msk.f32.gmra.mxu2 %vm353_vm0, %v333_v43  ;;  %1330 = vmatmul.msk.f32.gmra.mxu3 %vm353_vm0, %v333_v43  ;;  %2425 = vst [vmem:[#allocation28_spill] sm:$0xff] %v2055_v59  ;;  %v2106_v43 = vld [vmem:[#allocation10 + $0x10] sm:$0xff] }
  0x5c   : > { %556 = vmatpush.msrb.mxu0 %v2011_v44  ;;  %576 = vmatpush.msrb.mxu1 %v2013_v45  ;;  %2426 = vst [vmem:[#allocation29_spill] sm:$0xff] %v2064_v61 }
  0x5d   : > { %596 = vmatpush.msrb.mxu2 %v2017_v46  ;;  %616 = vmatpush.msrb.mxu3 %v2019_v47  ;;  %2427 = vst [vmem:[#allocation30_spill] sm:$0xff] %v2066_v62 }
  0x5e   : > { %557 = vmatpush.msrb.mxu0 %v2023_v48  ;;  %577 = vmatpush.msrb.mxu1 %v2025_v49  ;;  %2428 = vst [vmem:[#allocation31_spill] sm:$0xff] %v2070_v63 }
  0x5f   : > { %597 = vmatpush.msrb.mxu2 %v2029_v50  ;;  %617 = vmatpush.msrb.mxu3 %v2031_v51  ;;  %2429 = vst [vmem:[#allocation32_spill] sm:$0xff] %v2072_v0 }
  0x60   : > { %558 = vmatpush.msrb.mxu0 %v2035_v52  ;;  %578 = vmatpush.msrb.mxu1 %v2037_v53  ;;  %2430 = vst [vmem:[#allocation33_spill] sm:$0xff] %v2076_v1 }
  0x61   : > { %598 = vmatpush.msrb.mxu2 %v2041_v54  ;;  %618 = vmatpush.msrb.mxu3 %v2043_v55  ;;  %2431 = vst [vmem:[#allocation34_spill] sm:$0xff] %v2078_v2 }
  0x62   : > { %559 = vmatpush.msrb.mxu0 %v2047_v56  ;;  %579 = vmatpush.msrb.mxu1 %v2049_v57  ;;  %2432 = vst [vmem:[#allocation35_spill] sm:$0xff] %v2082_v3 }
  0x63   : > { %599 = vmatpush.msrb.mxu2 %v2053_v58  ;;  %619 = vmatpush.msrb.mxu3 %v2055_v59  ;;  %2433 = vst [vmem:[#allocation36_spill] sm:$0xff] %v2084_v4 }
  0x64   : > { %1319 = vmatmul.msk.f32.gmra.mxu0 %vm353_vm0, %v334_v60  ;;  %1323 = vmatmul.msk.f32.gmra.mxu1 %vm353_vm0, %v334_v60  ;;  %2434 = vst [vmem:[#allocation37_spill] sm:$0xff] %v2088_v5 }
  0x65   : > { %1327 = vmatmul.msk.f32.gmra.mxu2 %vm353_vm0, %v334_v60  ;;  %1331 = vmatmul.msk.f32.gmra.mxu3 %vm353_vm0, %v334_v60  ;;  %2435 = vst [vmem:[#allocation38_spill] sm:$0xff] %v2090_v6  ;;  %v2108_v60 = vld [vmem:[#allocation10 + $0x18] sm:$0xff] }
  0x66   : > { %560 = vmatpush.msrb.mxu0 %v2064_v61  ;;  %580 = vmatpush.msrb.mxu1 %v2066_v62  ;;  %2436 = vst [vmem:[#allocation39_spill] sm:$0xff] %v2094_v7 }
  0x67   : > { %600 = vmatpush.msrb.mxu2 %v2070_v63  ;;  %620 = vmatpush.msrb.mxu3 %v2072_v0  ;;  %2437 = vst [vmem:[#allocation40_spill] sm:$0xff] %v2096_v8 }
  0x68   : > { %561 = vmatpush.msrb.mxu0 %v2076_v1  ;;  %581 = vmatpush.msrb.mxu1 %v2078_v2  ;;  %2438 = vst [vmem:[#allocation41_spill] sm:$0xff] %v2100_v9  ;;  %v482_v2 = vld [vmem:[#allocation2] sm:$0xff] }
  0x69   : > { %601 = vmatpush.msrb.mxu2 %v2082_v3  ;;  %621 = vmatpush.msrb.mxu3 %v2084_v4  ;;  %2439 = vst [vmem:[#allocation42_spill] sm:$0xff] %v2102_v26 }
  0x6a   : > { %562 = vmatpush.msrb.mxu0 %v2088_v5  ;;  %582 = vmatpush.msrb.mxu1 %v2090_v6  ;;  %2440 = vst [vmem:[#allocation43_spill] sm:$0xff] %v2106_v43 }
  0x6b   : > { %2441 = vst [vmem:[#allocation44_spill] sm:$0xff] %v2108_v60  ;;  %602 = vmatpush.msrb.mxu2 %v2094_v7  ;;  %622 = vmatpush.msrb.mxu3 %v2096_v8 }
  0x6c   : > { %563 = vmatpush.msrb.mxu0 %v2100_v9  ;;  %583 = vmatpush.msrb.mxu1 %v2102_v26 }
  0x6d   : > { %603 = vmatpush.msrb.mxu2 %v2106_v43  ;;  %623 = vmatpush.msrb.mxu3 %v2108_v60 }
  0x6e   : > { %564 = vmatmul.f32.vlgmr.msrb.gmra.mxu0 %v482_v2  ;;  %584 = vmatmul.f32.vlgmr.msrb.gmra.mxu1 %v482_v2 }
  0x6f   : > { %604 = vmatmul.f32.vlgmr.msrb.gmra.mxu2 %v482_v2  ;;  %624 = vmatmul.f32.vlgmr.msrb.gmra.mxu3 %v482_v2  ;;  %v2442_v2 = vld [vmem:[#allocation34_spill] sm:$0xff] }
  0x70   : > { %695 = vmatpush.msra.mxu0 %v1905_v10  ;;  %715 = vmatpush.msra.mxu1 %v1907_v11 }
  0x71   : > { %735 = vmatpush.msra.mxu2 %v1911_v12  ;;  %755 = vmatpush.msra.mxu3 %v1913_v13 }
  0x72   : > { %696 = vmatpush.msra.mxu0 %v1917_v14  ;;  %716 = vmatpush.msra.mxu1 %v1919_v15 }
  0x73   : > { %736 = vmatpush.msra.mxu2 %v1923_v16  ;;  %756 = vmatpush.msra.mxu3 %v1925_v17 }
  0x74   : > { %697 = vmatpush.msra.mxu0 %v1929_v18  ;;  %717 = vmatpush.msra.mxu1 %v1931_v19 }
  0x75   : > { %737 = vmatpush.msra.mxu2 %v1935_v20  ;;  %757 = vmatpush.msra.mxu3 %v1937_v21 }
  0x76   : > { %698 = vmatpush.msra.mxu0 %v1941_v22  ;;  %718 = vmatpush.msra.mxu1 %v1943_v23 }
  0x77   : > { %738 = vmatpush.msra.mxu2 %v1947_v24  ;;  %758 = vmatpush.msra.mxu3 %v1949_v25 }
  0x78   : > { %699 = vmatpush.msra.mxu0 %v1958_v27  ;;  %719 = vmatpush.msra.mxu1 %v1960_v28 }
  0x79   : > { %739 = vmatpush.msra.mxu2 %v1964_v29  ;;  %759 = vmatpush.msra.mxu3 %v1966_v30 }
  0x7a   : > { %700 = vmatpush.msra.mxu0 %v1970_v31  ;;  %720 = vmatpush.msra.mxu1 %v1972_v32 }
  0x7b   : > { %740 = vmatpush.msra.mxu2 %v1976_v33  ;;  %760 = vmatpush.msra.mxu3 %v1978_v34 }
  0x7c   : > { %701 = vmatpush.msra.mxu0 %v1982_v35  ;;  %721 = vmatpush.msra.mxu1 %v1984_v36 }
  0x7d   : > { %741 = vmatpush.msra.mxu2 %v1988_v37  ;;  %761 = vmatpush.msra.mxu3 %v1990_v38 }
  0x7e   : > { %702 = vmatpush.msra.mxu0 %v1994_v39  ;;  %722 = vmatpush.msra.mxu1 %v1996_v40 }
  0x7f   : > { %742 = vmatpush.msra.mxu2 %v2000_v41  ;;  %762 = vmatpush.msra.mxu3 %v2002_v42 }
  0x80   : > { %703 = vmatpush.msra.mxu0 %v2011_v44  ;;  %723 = vmatpush.msra.mxu1 %v2013_v45 }
  0x81   : > { %743 = vmatpush.msra.mxu2 %v2017_v46  ;;  %763 = vmatpush.msra.mxu3 %v2019_v47 }
  0x82   : > { %704 = vmatpush.msra.mxu0 %v2023_v48  ;;  %724 = vmatpush.msra.mxu1 %v2025_v49 }
  0x83   : > { %744 = vmatpush.msra.mxu2 %v2029_v50  ;;  %764 = vmatpush.msra.mxu3 %v2031_v51 }
  0x84   : > { %705 = vmatpush.msra.mxu0 %v2035_v52  ;;  %725 = vmatpush.msra.mxu1 %v2037_v53 }
  0x85   : > { %745 = vmatpush.msra.mxu2 %v2041_v54  ;;  %765 = vmatpush.msra.mxu3 %v2043_v55 }
  0x86   : > { %706 = vmatpush.msra.mxu0 %v2047_v56  ;;  %726 = vmatpush.msra.mxu1 %v2049_v57 }
  0x87   : > { %746 = vmatpush.msra.mxu2 %v2053_v58  ;;  %766 = vmatpush.msra.mxu3 %v2055_v59 }
  0x88   : > { %707 = vmatpush.msra.mxu0 %v2064_v61  ;;  %727 = vmatpush.msra.mxu1 %v2066_v62 }
  0x89   : > { %747 = vmatpush.msra.mxu2 %v2070_v63  ;;  %767 = vmatpush.msra.mxu3 %v2072_v0 }
  0x8a   : > { %708 = vmatpush.msra.mxu0 %v2076_v1  ;;  %728 = vmatpush.msra.mxu1 %v2442_v2 }
  0x8b   : > { %748 = vmatpush.msra.mxu2 %v2082_v3  ;;  %768 = vmatpush.msra.mxu3 %v2084_v4 }
  0x8c   : > { %709 = vmatpush.msra.mxu0 %v2088_v5  ;;  %729 = vmatpush.msra.mxu1 %v2090_v6 }
  0x8d   : > { %749 = vmatpush.msra.mxu2 %v2094_v7  ;;  %769 = vmatpush.msra.mxu3 %v2096_v8 }
  0x8e   : > { %710 = vmatpush.msra.mxu0 %v2100_v9  ;;  %730 = vmatpush.msra.mxu1 %v2102_v26 }
  0x8f   : > { %750 = vmatpush.msra.mxu2 %v2106_v43  ;;  %770 = vmatpush.msra.mxu3 %v2108_v60 }
  0x90   : > { %842 = vmatpush.msrb.mxu0 %v1905_v10  ;;  %862 = vmatpush.msrb.mxu1 %v1907_v11 }
  0x91   : > { %882 = vmatpush.msrb.mxu2 %v1911_v12  ;;  %902 = vmatpush.msrb.mxu3 %v1913_v13 }
  0x92   : > { %843 = vmatpush.msrb.mxu0 %v1917_v14  ;;  %863 = vmatpush.msrb.mxu1 %v1919_v15 }
  0x93   : > { %883 = vmatpush.msrb.mxu2 %v1923_v16  ;;  %903 = vmatpush.msrb.mxu3 %v1925_v17 }
  0x94   : > { %844 = vmatpush.msrb.mxu0 %v1929_v18  ;;  %864 = vmatpush.msrb.mxu1 %v1931_v19 }
  0x95   : > { %884 = vmatpush.msrb.mxu2 %v1935_v20  ;;  %904 = vmatpush.msrb.mxu3 %v1937_v21 }
  0x96   : > { %845 = vmatpush.msrb.mxu0 %v1941_v22  ;;  %865 = vmatpush.msrb.mxu1 %v1943_v23 }
  0x97   : > { %885 = vmatpush.msrb.mxu2 %v1947_v24  ;;  %905 = vmatpush.msrb.mxu3 %v1949_v25 }
  0x98   : > { %846 = vmatpush.msrb.mxu0 %v1958_v27  ;;  %866 = vmatpush.msrb.mxu1 %v1960_v28 }
  0x99   : > { %886 = vmatpush.msrb.mxu2 %v1964_v29  ;;  %906 = vmatpush.msrb.mxu3 %v1966_v30 }
  0x9a   : > { %847 = vmatpush.msrb.mxu0 %v1970_v31  ;;  %867 = vmatpush.msrb.mxu1 %v1972_v32 }
  0x9b   : > { %887 = vmatpush.msrb.mxu2 %v1976_v33  ;;  %907 = vmatpush.msrb.mxu3 %v1978_v34 }
  0x9c   : > { %848 = vmatpush.msrb.mxu0 %v1982_v35  ;;  %868 = vmatpush.msrb.mxu1 %v1984_v36 }
  0x9d   : > { %888 = vmatpush.msrb.mxu2 %v1988_v37  ;;  %908 = vmatpush.msrb.mxu3 %v1990_v38 }
  0x9e   : > { %849 = vmatpush.msrb.mxu0 %v1994_v39  ;;  %869 = vmatpush.msrb.mxu1 %v1996_v40 }
  0x9f   : > { %889 = vmatpush.msrb.mxu2 %v2000_v41  ;;  %909 = vmatpush.msrb.mxu3 %v2002_v42 }
  0xa0   : > { %850 = vmatpush.msrb.mxu0 %v2011_v44  ;;  %870 = vmatpush.msrb.mxu1 %v2013_v45 }
  0xa1   : > { %890 = vmatpush.msrb.mxu2 %v2017_v46  ;;  %910 = vmatpush.msrb.mxu3 %v2019_v47 }
  0xa2   : > { %851 = vmatpush.msrb.mxu0 %v2023_v48  ;;  %871 = vmatpush.msrb.mxu1 %v2025_v49 }
  0xa3   : > { %891 = vmatpush.msrb.mxu2 %v2029_v50  ;;  %911 = vmatpush.msrb.mxu3 %v2031_v51 }
  0xa4   : > { %852 = vmatpush.msrb.mxu0 %v2035_v52  ;;  %872 = vmatpush.msrb.mxu1 %v2037_v53 }
  0xa5   : > { %892 = vmatpush.msrb.mxu2 %v2041_v54  ;;  %912 = vmatpush.msrb.mxu3 %v2043_v55 }
  0xa6   : > { %853 = vmatpush.msrb.mxu0 %v2047_v56  ;;  %873 = vmatpush.msrb.mxu1 %v2049_v57 }
  0xa7   : > { %893 = vmatpush.msrb.mxu2 %v2053_v58  ;;  %913 = vmatpush.msrb.mxu3 %v2055_v59 }
  0xa8   : > { %854 = vmatpush.msrb.mxu0 %v2064_v61  ;;  %874 = vmatpush.msrb.mxu1 %v2066_v62 }
  0xa9   : > { %894 = vmatpush.msrb.mxu2 %v2070_v63  ;;  %914 = vmatpush.msrb.mxu3 %v2072_v0 }
  0xaa   : > { %855 = vmatpush.msrb.mxu0 %v2076_v1  ;;  %875 = vmatpush.msrb.mxu1 %v2442_v2  ;;  %v343_v1 = vld [vmem:[#allocation11] sm:$0xf] }
  0xab   : > { %895 = vmatpush.msrb.mxu2 %v2082_v3  ;;  %915 = vmatpush.msrb.mxu3 %v2084_v4  ;;  %v346_v63 = vperm.slane %v343_v1, 1  ;;  %v348_v61 = vperm.slane %v343_v1, 3 }
  0xac   : > { %856 = vmatpush.msrb.mxu0 %v2088_v5  ;;  %876 = vmatpush.msrb.mxu1 %v2090_v6  ;;  %v345_v5 = vperm.slane %v343_v1, 0 }
  0xad   : > { %896 = vmatpush.msrb.mxu2 %v2094_v7  ;;  %916 = vmatpush.msrb.mxu3 %v2096_v8 }
  0xae   : > { %857 = vmatpush.msrb.mxu0 %v2100_v9  ;;  %877 = vmatpush.msrb.mxu1 %v2102_v26  ;;  %v347_v9 = vperm.slane %v343_v1, 2 }
  0xaf   : > { %897 = vmatpush.msrb.mxu2 %v2106_v43  ;;  %917 = vmatpush.msrb.mxu3 %v2108_v60 }
  0xc3   : > { %v383_v2 = vpop.f32.mrf.mxu0  ;;  %v412_v3 = vpop.f32.mrf.mxu1 }
  0xca   : > { %v441_v4 = vpop.f32.mrf.mxu2  ;;  %v470_v0 = vpop.f32.mrf.mxu3 }
  0xcb   : > { %v471_v51 = vadd.f32 %v470_v0, %v348_v61 }
  0xcd   : > { %v386_v6 = vpop.f32.mrf.mxu0  ;;  %v415_v62 = vpop.f32.mrf.mxu1 }
  0xce   : > { %v2244_v7 = vadd.f32 %v386_v6, %v345_v5  ;;  %v2246_v8 = vadd.f32 %v415_v62, %v346_v63 }
  0xd0   : > { %2443 = vst [vmem:[#allocation45_spill] sm:$0xff] %v2244_v7 }
  0xd1   : > { %2444 = vst [vmem:[#allocation46_spill] sm:$0xff] %v2246_v8 }
  0xd4   : > { %v444_v26 = vpop.f32.mrf.mxu2  ;;  %v473_v59 = vpop.f32.mrf.mxu3 }
  0xd5   : > { %v2248_v43 = vadd.f32 %v444_v26, %v347_v9  ;;  %v2250_v60 = vadd.f32 %v473_v59, %v348_v61 }
  0xd7   : > { %2445 = vst [vmem:[#allocation47_spill] sm:$0xff] %v2248_v43  ;;  %v389_v58 = vpop.f32.mrf.mxu0  ;;  %v418_v57 = vpop.f32.mrf.mxu1 }
  0xd8   : > { %2446 = vst [vmem:[#allocation48_spill] sm:$0xff] %v2250_v60  ;;  %v2252_v56 = vadd.f32 %v389_v58, %v345_v5  ;;  %v2254_v55 = vadd.f32 %v418_v57, %v346_v63  ;;  %v384_v57 = vadd.f32 %v383_v2, %v345_v5 }
  0xda   : > { %2447 = vst [vmem:[#allocation49_spill] sm:$0xff] %v2252_v56 }
  0xdb   : > { %2448 = vst [vmem:[#allocation50_spill] sm:$0xff] %v2254_v55  ;;  %v413_v55 = vadd.f32 %v412_v3, %v346_v63 }
  0xde   : > { %v447_v54 = vpop.f32.mrf.mxu2  ;;  %v476_v53 = vpop.f32.mrf.mxu3 }
  0xdf   : > { %v2256_v6 = vadd.f32 %v447_v54, %v347_v9  ;;  %v2258_v62 = vadd.f32 %v476_v53, %v348_v61 }
  0xe1   : > { %2449 = vst [vmem:[#allocation51_spill] sm:$0xff] %v2256_v6  ;;  %v392_v8 = vpop.f32.mrf.mxu0  ;;  %v421_v1 = vpop.f32.mrf.mxu1 }
  0xe2   : > { %2450 = vst [vmem:[#allocation52_spill] sm:$0xff] %v2258_v62  ;;  %v2260_v7 = vadd.f32 %v392_v8, %v345_v5  ;;  %v2262_v26 = vadd.f32 %v421_v1, %v346_v63  ;;  %v442_v5 = vadd.f32 %v441_v4, %v347_v9 }
  0xe4   : > { %2451 = vst [vmem:[#allocation53_spill] sm:$0xff] %v2260_v7 }
  0xe5   : > { %2452 = vst [vmem:[#allocation54_spill] sm:$0xff] %v2262_v26 }
  0xe8   : > { %v450_v59 = vpop.f32.mrf.mxu2  ;;  %v479_v43 = vpop.f32.mrf.mxu3 }
  0xe9   : > { %v2264_v60 = vadd.f32 %v450_v59, %v347_v9  ;;  %v2266_v58 = vadd.f32 %v479_v43, %v348_v61 }
  0xeb   : > { %2453 = vst [vmem:[#allocation55_spill] sm:$0xff] %v2264_v60  ;;  %v565_v56 = vpop.f32.mrf.mxu0  ;;  %v585_v52 = vpop.f32.mrf.mxu1 }
  0xec   : > { %2454 = vst [vmem:[#allocation56_spill] sm:$0xff] %v2266_v58  ;;  %v628_v54 = vadd.f32 %v565_v56, %v384_v57  ;;  %v629_v6 = vadd.f32 %v585_v52, %v413_v55 }
  0xee   : > { %v1332_v53 = vmul.f32 -1.442695, %v628_v54  ;;  %v1333_v62 = vmul.f32 -1.442695, %v629_v6 }
  0xf0   : > { %1443 = vpow2.f32 %v1332_v53 }
  0xf1   : > { %1445 = vpow2.f32 %v1333_v62 }
  0xf2   : > { %v625_v8 = vpop.f32.mrf.mxu3  ;;  %v605_v63 = vpop.f32.mrf.mxu2 }
  0xf3   : > { %v631_v1 = vadd.f32 %v625_v8, %v471_v51  ;;  %v630_v55 = vadd.f32 %v605_v63, %v442_v5 }
  0xf5   : > { %v1334_v26 = vmul.f32 -1.442695, %v631_v1 }
  0xf6   : > { %v1444_v7 = vpop.eup %1443 }
  0xf7   : > { %v1446_v50 = vpop.eup %1445  ;;  %v635_v59 = vadd.f32 1.0, %v1444_v7  ;;  %1447 = vpow2.f32 %v1334_v26 }
  0xf8   : > { %v654_v43 = vadd.f32 1.0, %v1446_v50 }
  0xf9   : > { %1449 = vrcp.f32 %v635_v59  ;;  %v647_v62 = vand.u32 2147483648, %v635_v59  ;;  %v645_v50 = vand.u32 2147483647, %v635_v59  ;;  %vm641_vm3 = vweird.f32 %v635_v59 }
  0xfa   : > { %1451 = vrcp.f32 %v654_v43  ;;  %v666_v57 = vand.u32 2147483648, %v654_v43  ;;  %v664_v54 = vand.u32 2147483647, %v654_v43  ;;  %vm660_vm4 = vweird.f32 %v654_v43 }
  0xfb   : > { %v648_v9 = vor.u32 1.1754944e-38, %v647_v62  ;;  %vm646_vm7 = vcmp.eq.f32.partialorder %v645_v50, 8.507059e+37 }
  0xfc   : > { %v667_v63 = vor.u32 1.1754944e-38, %v666_v57  ;;  %vm665_vm8 = vcmp.eq.f32.partialorder %v664_v54, 8.507059e+37 }
  0xfd   : > { %v1448_v3 = vpop.eup %1447 }
  0xfe   : > { %v674_v56 = vadd.f32 1.0, %v1448_v3  ;;  %v483_v3 = vld [vmem:[#allocation3] sm:$0xff] }
  0xff   : > { %v1450_v52 = vpop.eup %1449 }
 0x100   : > { %v1452_v2 = vpop.eup %1451  ;;  %v637_v6 = vmul.f32 %v1450_v52, %v635_v59  ;;  %1453 = vrcp.f32 %v674_v56  ;;  %vm642_vm1 = vweird.f32 %v1450_v52  ;;  %v686_v62 = vand.u32 2147483648, %v674_v56 }
 0x101   : > { %v656_v61 = vmul.f32 %v1452_v2, %v654_v43  ;;  %1455 = vtanh.f32 %v630_v55  ;;  %vm661_vm2 = vweird.f32 %v1452_v2  ;;  %vm643_vm5 = vmor %vm641_vm3, %vm642_vm1  ;;  %vm680_vm10 = vweird.f32 %v674_v56 }
 0x102   : > { %v638_v0 = vsub.f32 1.0, %v637_v6  ;;  %vm662_vm6 = vmor %vm660_vm4, %vm661_vm2  ;;  %v684_v57 = vand.u32 2147483647, %v674_v56  ;;  %v687_v50 = vor.u32 1.1754944e-38, %v686_v62 }
 0x103   : > { %v657_v51 = vsub.f32 1.0, %v656_v61 }
 0x104   : > { %v639_v7 = vmul.f32 %v1450_v52, %v638_v0  ;;  %vm685_vm12 = vcmp.eq.f32.partialorder %v684_v57, 8.507059e+37 }
 0x105   : > { %v658_v26 = vmul.f32 %v1452_v2, %v657_v51 }
 0x106   : > { %v1454_v53 = vpop.eup %1453  ;;  %v640_v4 = vadd.f32 %v1450_v52, %v639_v7 }
 0x107   : > { %v659_v8 = vadd.f32 %v1452_v2, %v658_v26  ;;  %v676_v1 = vmul.f32 %v1454_v53, %v674_v56  ;;  %v1456_v55 = vpop.eup %1455  ;;  %vm681_vm9 = vweird.f32 %v1454_v53 }
 0x108   : > { %v644_v5 = vsel %vm643_vm5, %v1450_v52, %v640_v4  ;;  %vm682_vm11 = vmor %vm680_vm10, %vm681_vm9 }
 0x109   : > { %v649_v6 = vsel %vm646_vm7, %v648_v9, %v644_v5  ;;  %v663_v61 = vsel %vm662_vm6, %v1452_v2, %v659_v8  ;;  %v677_v0 = vsub.f32 1.0, %v676_v1 }
 0x10a   : > { %v668_v51 = vsel %vm665_vm8, %v667_v63, %v663_v61  ;;  %v691_v60 = vmul.f32 %v1456_v55, %v649_v6  ;;  %v2484_v63 = vld [vmem:[#allocation47_spill] sm:$0xff] }
 0x10b   : > { %v690_v58 = vmul.f32 %v668_v51, %v483_v3  ;;  %v678_v7 = vmul.f32 %v1454_v53, %v677_v0 }
 0x10d   : > { %v2268_v59 = vadd.f32 %v691_v60, %v690_v58  ;;  %v679_v43 = vadd.f32 %v1454_v53, %v678_v7 }
 0x10f   : > { %1457 = vtanh.f32 %v2268_v59  ;;  %v683_v52 = vsel %vm682_vm11, %v1454_v53, %v679_v43 }
 0x110   : > { %v688_v26 = vsel %vm685_vm12, %v687_v50, %v683_v52 }
 0x115   : > { %v1458_v2 = vpop.eup %1457 }
 0x116   : > { %v694_v54 = vmul.f32 %v1458_v2, %v688_v26 }
 0x118   : > { %711 = vmatmul.f32.vlgmr.msra.gmra.mxu0 %v694_v54  ;;  %731 = vmatmul.f32.vlgmr.msra.gmra.mxu1 %v694_v54 }
 0x119   : > { %751 = vmatmul.f32.vlgmr.msra.gmra.mxu2 %v694_v54  ;;  %771 = vmatmul.f32.vlgmr.msra.gmra.mxu3 %v694_v54 }
 0x11a   : > { %989 = vmatpush.msra.mxu0 %v1905_v10  ;;  %1009 = vmatpush.msra.mxu1 %v1907_v11  ;;  %v2455_v10 = vld [vmem:[#allocation19_spill] sm:$0xff]  ;;  %v2456_v11 = vld [vmem:[#allocation20_spill] sm:$0xff] }
 0x11b   : > { %1029 = vmatpush.msra.mxu2 %v1911_v12  ;;  %1049 = vmatpush.msra.mxu3 %v1913_v13  ;;  %v2457_v12 = vld [vmem:[#allocation21_spill] sm:$0xff]  ;;  %v2458_v13 = vld [vmem:[#allocation22_spill] sm:$0xff] }
 0x11c   : > { %990 = vmatpush.msra.mxu0 %v1917_v14  ;;  %1010 = vmatpush.msra.mxu1 %v1919_v15  ;;  %v2459_v14 = vld [vmem:[#allocation23_spill] sm:$0xff]  ;;  %v2460_v15 = vld [vmem:[#allocation24_spill] sm:$0xff] }
 0x11d   : > { %1030 = vmatpush.msra.mxu2 %v1923_v16  ;;  %1050 = vmatpush.msra.mxu3 %v1925_v17  ;;  %v2461_v16 = vld [vmem:[#allocation25_spill] sm:$0xff]  ;;  %v2462_v17 = vld [vmem:[#allocation26_spill] sm:$0xff] }
 0x11e   : > { %991 = vmatpush.msra.mxu0 %v1929_v18  ;;  %1011 = vmatpush.msra.mxu1 %v1931_v19  ;;  %v2463_v18 = vld [vmem:[#allocation27_spill] sm:$0xff]  ;;  %v2464_v19 = vld [vmem:[#allocation28_spill] sm:$0xff] }
 0x11f   : > { %1031 = vmatpush.msra.mxu2 %v1935_v20  ;;  %1051 = vmatpush.msra.mxu3 %v1937_v21  ;;  %v2465_v20 = vld [vmem:[#allocation29_spill] sm:$0xff]  ;;  %v2466_v21 = vld [vmem:[#allocation30_spill] sm:$0xff] }
 0x120   : > { %992 = vmatpush.msra.mxu0 %v1941_v22  ;;  %1012 = vmatpush.msra.mxu1 %v1943_v23  ;;  %v2467_v22 = vld [vmem:[#allocation31_spill] sm:$0xff]  ;;  %v2468_v23 = vld [vmem:[#allocation32_spill] sm:$0xff] }
 0x121   : > { %1032 = vmatpush.msra.mxu2 %v1947_v24  ;;  %1052 = vmatpush.msra.mxu3 %v1949_v25  ;;  %v2469_v24 = vld [vmem:[#allocation33_spill] sm:$0xff]  ;;  %v2470_v25 = vld [vmem:[#allocation34_spill] sm:$0xff] }
 0x122   : > { %993 = vmatpush.msra.mxu0 %v1958_v27  ;;  %1013 = vmatpush.msra.mxu1 %v1960_v28  ;;  %v2471_v27 = vld [vmem:[#allocation35_spill] sm:$0xff]  ;;  %v2472_v28 = vld [vmem:[#allocation36_spill] sm:$0xff] }
 0x123   : > { %1033 = vmatpush.msra.mxu2 %v1964_v29  ;;  %1053 = vmatpush.msra.mxu3 %v1966_v30  ;;  %v2473_v29 = vld [vmem:[#allocation37_spill] sm:$0xff]  ;;  %v2474_v30 = vld [vmem:[#allocation38_spill] sm:$0xff] }
 0x124   : > { %994 = vmatpush.msra.mxu0 %v1970_v31  ;;  %1014 = vmatpush.msra.mxu1 %v1972_v32  ;;  %v2475_v31 = vld [vmem:[#allocation39_spill] sm:$0xff]  ;;  %v2476_v32 = vld [vmem:[#allocation40_spill] sm:$0xff] }
 0x125   : > { %1034 = vmatpush.msra.mxu2 %v1976_v33  ;;  %1054 = vmatpush.msra.mxu3 %v1978_v34  ;;  %v2477_v33 = vld [vmem:[#allocation41_spill] sm:$0xff]  ;;  %v2478_v34 = vld [vmem:[#allocation42_spill] sm:$0xff] }
 0x126   : > { %995 = vmatpush.msra.mxu0 %v1982_v35  ;;  %1015 = vmatpush.msra.mxu1 %v1984_v36  ;;  %v2479_v35 = vld [vmem:[#allocation43_spill] sm:$0xff]  ;;  %v2480_v36 = vld [vmem:[#allocation44_spill] sm:$0xff] }
 0x127   : > { %1035 = vmatpush.msra.mxu2 %v1988_v37  ;;  %1055 = vmatpush.msra.mxu3 %v1990_v38 }
 0x128   : > { %996 = vmatpush.msra.mxu0 %v1994_v39  ;;  %1016 = vmatpush.msra.mxu1 %v1996_v40  ;;  %v2481_v39 = vld [vmem:[#allocation45_spill] sm:$0xff] }
 0x129   : > { %1036 = vmatpush.msra.mxu2 %v2000_v41  ;;  %1056 = vmatpush.msra.mxu3 %v2002_v42  ;;  %v2482_v41 = vld [vmem:[#allocation46_spill] sm:$0xff] }
 0x12a   : > { %997 = vmatpush.msra.mxu0 %v2011_v44  ;;  %1017 = vmatpush.msra.mxu1 %v2013_v45 }
 0x12b   : > { %1037 = vmatpush.msra.mxu2 %v2017_v46  ;;  %1057 = vmatpush.msra.mxu3 %v2019_v47  ;;  %v2483_v47 = vld [vmem:[#allocation48_spill] sm:$0xff] }
 0x12c   : > { %998 = vmatpush.msra.mxu0 %v2023_v48  ;;  %1018 = vmatpush.msra.mxu1 %v2025_v49 }
 0x12d   : > { %1038 = vmatpush.msra.mxu2 %v2455_v10  ;;  %1058 = vmatpush.msra.mxu3 %v2456_v11 }
 0x12e   : > { %999 = vmatpush.msra.mxu0 %v2457_v12  ;;  %1019 = vmatpush.msra.mxu1 %v2458_v13 }
 0x12f   : > { %1039 = vmatpush.msra.mxu2 %v2459_v14  ;;  %1059 = vmatpush.msra.mxu3 %v2460_v15 }
 0x130   : > { %1000 = vmatpush.msra.mxu0 %v2461_v16  ;;  %1020 = vmatpush.msra.mxu1 %v2462_v17 }
 0x131   : > { %1040 = vmatpush.msra.mxu2 %v2463_v18  ;;  %1060 = vmatpush.msra.mxu3 %v2464_v19 }
 0x132   : > { %1001 = vmatpush.msra.mxu0 %v2465_v20  ;;  %1021 = vmatpush.msra.mxu1 %v2466_v21 }
 0x133   : > { %1041 = vmatpush.msra.mxu2 %v2467_v22  ;;  %1061 = vmatpush.msra.mxu3 %v2468_v23 }
 0x134   : > { %1002 = vmatpush.msra.mxu0 %v2469_v24  ;;  %1022 = vmatpush.msra.mxu1 %v2470_v25 }
 0x135   : > { %1042 = vmatpush.msra.mxu2 %v2471_v27  ;;  %1062 = vmatpush.msra.mxu3 %v2472_v28 }
 0x136   : > { %1003 = vmatpush.msra.mxu0 %v2473_v29  ;;  %1023 = vmatpush.msra.mxu1 %v2474_v30 }
 0x137   : > { %1043 = vmatpush.msra.mxu2 %v2475_v31  ;;  %1063 = vmatpush.msra.mxu3 %v2476_v32  ;;  %v2485_v32 = vld [vmem:[#allocation49_spill] sm:$0xff] }
 0x138   : > { %1004 = vmatpush.msra.mxu0 %v2477_v33  ;;  %1024 = vmatpush.msra.mxu1 %v2478_v34  ;;  %v2486_v34 = vld [vmem:[#allocation50_spill] sm:$0xff] }
 0x139   : > { %1044 = vmatpush.msra.mxu2 %v2479_v35  ;;  %1064 = vmatpush.msra.mxu3 %v2480_v36 }
 0x195   : > { %v712_v37 = vpop.f32.mrf.mxu0  ;;  %v732_v38 = vpop.f32.mrf.mxu1 }
 0x196   : > { %v775_v40 = vadd.f32 %v712_v37, %v2481_v39  ;;  %v776_v42 = vadd.f32 %v732_v38, %v2482_v41  ;;  %v2487_v39 = vld [vmem:[#allocation52_spill] sm:$0xff] }
 0x198   : > { %v1335_v44 = vmul.f32 -1.442695, %v775_v40  ;;  %v1336_v45 = vmul.f32 -1.442695, %v776_v42 }
 0x19a   : > { %1459 = vpow2.f32 %v1335_v44 }
 0x19b   : > { %1461 = vpow2.f32 %v1336_v45 }
 0x19c   : > { %v772_v46 = vpop.f32.mrf.mxu3  ;;  %v752_v4 = vpop.f32.mrf.mxu2 }
 0x19d   : > { %v778_v48 = vadd.f32 %v772_v46, %v2483_v47  ;;  %v777_v3 = vadd.f32 %v752_v4, %v2484_v63 }
 0x19f   : > { %v1337_v49 = vmul.f32 -1.442695, %v778_v48 }
 0x1a0   : > { %v1460_v60 = vpop.eup %1459 }
 0x1a1   : > { %v1462_v58 = vpop.eup %1461  ;;  %v782_v56 = vadd.f32 1.0, %v1460_v60  ;;  %1463 = vpow2.f32 %v1337_v49 }
 0x1a2   : > { %v801_v53 = vadd.f32 1.0, %v1462_v58  ;;  %v2488_v58 = vld [vmem:[#allocation51_spill] sm:$0xff] }
 0x1a3   : > { %1465 = vrcp.f32 %v782_v56  ;;  %v794_v51 = vand.u32 2147483648, %v782_v56  ;;  %v792_v62 = vand.u32 2147483647, %v782_v56  ;;  %vm788_vm15 = vweird.f32 %v782_v56 }
 0x1a4   : > { %1467 = vrcp.f32 %v801_v53  ;;  %v813_v7 = vand.u32 2147483648, %v801_v53  ;;  %v811_v52 = vand.u32 2147483647, %v801_v53  ;;  %vm807_vm0 = vweird.f32 %v801_v53 }
 0x1a5   : > { %v795_v26 = vor.u32 1.1754944e-38, %v794_v51  ;;  %vm793_vm3 = vcmp.eq.f32.partialorder %v792_v62, 8.507059e+37 }
 0x1a6   : > { %v814_v11 = vor.u32 1.1754944e-38, %v813_v7  ;;  %vm812_vm4 = vcmp.eq.f32.partialorder %v811_v52, 8.507059e+37 }
 0x1a7   : > { %v1464_v9 = vpop.eup %1463 }
 0x1a8   : > { %v821_v8 = vadd.f32 1.0, %v1464_v9 }
 0x1a9   : > { %v1466_v1 = vpop.eup %1465 }
 0x1aa   : > { %v1468_v5 = vpop.eup %1467  ;;  %v784_v55 = vmul.f32 %v1466_v1, %v782_v56  ;;  %1469 = vrcp.f32 %v821_v8  ;;  %vm789_vm13 = vweird.f32 %v1466_v1  ;;  %v833_v23 = vand.u32 2147483648, %v821_v8 }
 0x1ab   : > { %v803_v6 = vmul.f32 %v1468_v5, %v801_v53  ;;  %1471 = vtanh.f32 %v777_v3  ;;  %vm808_vm14 = vweird.f32 %v1468_v5  ;;  %vm790_vm1 = vmor %vm788_vm15, %vm789_vm13  ;;  %vm827_vm6 = vweird.f32 %v821_v8 }
 0x1ac   : > { %v785_v61 = vsub.f32 1.0, %v784_v55  ;;  %vm809_vm2 = vmor %vm807_vm0, %vm808_vm14  ;;  %v831_v24 = vand.u32 2147483647, %v821_v8  ;;  %v834_v27 = vor.u32 1.1754944e-38, %v833_v23 }
 0x1ad   : > { %v804_v0 = vsub.f32 1.0, %v803_v6 }
 0x1ae   : > { %v786_v43 = vmul.f32 %v1466_v1, %v785_v61  ;;  %vm832_vm8 = vcmp.eq.f32.partialorder %v831_v24, 8.507059e+37 }
 0x1af   : > { %v805_v57 = vmul.f32 %v1468_v5, %v804_v0 }
 0x1b0   : > { %v1470_v50 = vpop.eup %1469  ;;  %v787_v2 = vadd.f32 %v1466_v1, %v786_v43 }
 0x1b1   : > { %v806_v54 = vadd.f32 %v1468_v5, %v805_v57  ;;  %v823_v10 = vmul.f32 %v1470_v50, %v821_v8  ;;  %v1472_v13 = vpop.eup %1471  ;;  %vm828_vm5 = vweird.f32 %v1470_v50 }
 0x1b2   : > { %v791_v12 = vsel %vm790_vm1, %v1466_v1, %v787_v2  ;;  %vm829_vm7 = vmor %vm827_vm6, %vm828_vm5 }
 0x1b3   : > { %v796_v14 = vsel %vm793_vm3, %v795_v26, %v791_v12  ;;  %v810_v15 = vsel %vm809_vm2, %v1468_v5, %v806_v54  ;;  %v824_v16 = vsub.f32 1.0, %v823_v10 }
 0x1b4   : > { %v815_v17 = vsel %vm812_vm4, %v814_v11, %v810_v15  ;;  %v838_v18 = vmul.f32 %v1472_v13, %v796_v14 }
 0x1b5   : > { %v837_v19 = vmul.f32 %v815_v17, %v2268_v59  ;;  %v825_v20 = vmul.f32 %v1470_v50, %v824_v16 }
 0x1b7   : > { %v2340_v21 = vadd.f32 %v838_v18, %v837_v19  ;;  %v826_v22 = vadd.f32 %v1470_v50, %v825_v20 }
 0x1b9   : > { %1473 = vtanh.f32 %v2340_v21  ;;  %v830_v25 = vsel %vm829_vm7, %v1470_v50, %v826_v22 }
 0x1ba   : > { %v835_v29 = vsel %vm832_vm8, %v834_v27, %v830_v25  ;;  %v2489_v25 = vld [vmem:[#allocation53_spill] sm:$0xff] }
 0x1bf   : > { %v1474_v28 = vpop.eup %1473 }
 0x1c0   : > { %v841_v30 = vmul.f32 %v1474_v28, %v835_v29  ;;  %v2490_v28 = vld [vmem:[#allocation54_spill] sm:$0xff] }
 0x1c2   : > { %858 = vmatmul.f32.vlgmr.msrb.gmra.mxu0 %v841_v30  ;;  %878 = vmatmul.f32.vlgmr.msrb.gmra.mxu1 %v841_v30 }
 0x1c3   : > { %898 = vmatmul.f32.vlgmr.msrb.gmra.mxu2 %v841_v30  ;;  %918 = vmatmul.f32.vlgmr.msrb.gmra.mxu3 %v841_v30 }
 0x23f   : > { %v859_v59 = vpop.f32.mrf.mxu0  ;;  %v879_v31 = vpop.f32.mrf.mxu1 }
 0x240   : > { %v922_v33 = vadd.f32 %v859_v59, %v2485_v32  ;;  %v923_v35 = vadd.f32 %v879_v31, %v2486_v34  ;;  %v2491_v32 = vld [vmem:[#allocation56_spill] sm:$0xff] }
 0x242   : > { %v1338_v36 = vmul.f32 -1.442695, %v922_v33  ;;  %v1339_v37 = vmul.f32 -1.442695, %v923_v35 }
 0x244   : > { %1475 = vpow2.f32 %v1338_v36 }
 0x245   : > { %1477 = vpow2.f32 %v1339_v37 }
 0x246   : > { %v919_v38 = vpop.f32.mrf.mxu3  ;;  %v899_v47 = vpop.f32.mrf.mxu2 }
 0x247   : > { %v925_v40 = vadd.f32 %v919_v38, %v2487_v39  ;;  %v924_v56 = vadd.f32 %v899_v47, %v2488_v58 }
 0x249   : > { %v1340_v41 = vmul.f32 -1.442695, %v925_v40 }
 0x24a   : > { %v1476_v42 = vpop.eup %1475 }
 0x24b   : > { %v1478_v44 = vpop.eup %1477  ;;  %v929_v45 = vadd.f32 1.0, %v1476_v42  ;;  %1479 = vpow2.f32 %v1340_v41 }
 0x24c   : > { %v948_v46 = vadd.f32 1.0, %v1478_v44  ;;  %v2492_v44 = vld [vmem:[#allocation55_spill] sm:$0xff] }
 0x24d   : > { %1481 = vrcp.f32 %v929_v45  ;;  %v941_v63 = vand.u32 2147483648, %v929_v45  ;;  %v939_v55 = vand.u32 2147483647, %v929_v45  ;;  %vm935_vm11 = vweird.f32 %v929_v45 }
 0x24e   : > { %1483 = vrcp.f32 %v948_v46  ;;  %v960_v3 = vand.u32 2147483648, %v948_v46  ;;  %v958_v61 = vand.u32 2147483647, %v948_v46  ;;  %vm954_vm12 = vweird.f32 %v948_v46 }
 0x24f   : > { %v942_v7 = vor.u32 1.1754944e-38, %v941_v63  ;;  %vm940_vm15 = vcmp.eq.f32.partialorder %v939_v55, 8.507059e+37 }
 0x250   : > { %v961_v57 = vor.u32 1.1754944e-38, %v960_v3  ;;  %vm959_vm0 = vcmp.eq.f32.partialorder %v958_v61, 8.507059e+37 }
 0x251   : > { %v1480_v48 = vpop.eup %1479 }
 0x252   : > { %v968_v49 = vadd.f32 1.0, %v1480_v48 }
 0x253   : > { %v1482_v60 = vpop.eup %1481 }
 0x254   : > { %v1484_v53 = vpop.eup %1483  ;;  %v931_v4 = vmul.f32 %v1482_v60, %v929_v45  ;;  %1485 = vrcp.f32 %v968_v49  ;;  %vm936_vm9 = vweird.f32 %v1482_v60  ;;  %v980_v16 = vand.u32 2147483648, %v968_v49 }
 0x255   : > { %v950_v9 = vmul.f32 %v1484_v53, %v948_v46  ;;  %1487 = vtanh.f32 %v924_v56  ;;  %vm955_vm10 = vweird.f32 %v1484_v53  ;;  %vm937_vm13 = vmor %vm935_vm11, %vm936_vm9  ;;  %vm974_vm2 = vweird.f32 %v968_v49 }
 0x256   : > { %v932_v8 = vsub.f32 1.0, %v931_v4  ;;  %vm956_vm14 = vmor %vm954_vm12, %vm955_vm10  ;;  %v978_v17 = vand.u32 2147483647, %v968_v49  ;;  %v981_v19 = vor.u32 1.1754944e-38, %v980_v16 }
 0x257   : > { %v951_v1 = vsub.f32 1.0, %v950_v9 }
 0x258   : > { %v933_v5 = vmul.f32 %v1482_v60, %v932_v8  ;;  %vm979_vm4 = vcmp.eq.f32.partialorder %v978_v17, 8.507059e+37 }
 0x259   : > { %v952_v6 = vmul.f32 %v1484_v53, %v951_v1 }
 0x25a   : > { %v1486_v0 = vpop.eup %1485  ;;  %v934_v51 = vadd.f32 %v1482_v60, %v933_v5 }
 0x25b   : > { %v953_v43 = vadd.f32 %v1484_v53, %v952_v6  ;;  %v970_v62 = vmul.f32 %v1486_v0, %v968_v49  ;;  %v1488_v50 = vpop.eup %1487  ;;  %vm975_vm1 = vweird.f32 %v1486_v0 }
 0x25c   : > { %v938_v52 = vsel %vm937_vm13, %v1482_v60, %v934_v51  ;;  %vm976_vm3 = vmor %vm974_vm2, %vm975_vm1 }
 0x25d   : > { %v943_v2 = vsel %vm940_vm15, %v942_v7, %v938_v52  ;;  %v957_v26 = vsel %vm956_vm14, %v1484_v53, %v953_v43  ;;  %v971_v54 = vsub.f32 1.0, %v970_v62 }
 0x25e   : > { %v962_v10 = vsel %vm959_vm0, %v961_v57, %v957_v26  ;;  %v985_v11 = vmul.f32 %v1488_v50, %v943_v2 }
 0x25f   : > { %v984_v12 = vmul.f32 %v962_v10, %v2340_v21  ;;  %v972_v13 = vmul.f32 %v1486_v0, %v971_v54 }
 0x261   : > { %v2348_v14 = vadd.f32 %v985_v11, %v984_v12  ;;  %v973_v15 = vadd.f32 %v1486_v0, %v972_v13 }
 0x263   : > { %1489 = vtanh.f32 %v2348_v14  ;;  %v977_v18 = vsel %vm976_vm3, %v1486_v0, %v973_v15 }
 0x264   : > { %v982_v22 = vsel %vm979_vm4, %v981_v19, %v977_v18 }
 0x269   : > { %v1490_v20 = vpop.eup %1489 }
 0x26a   : > { %v988_v23 = vmul.f32 %v1490_v20, %v982_v22 }
 0x26c   : > { %1005 = vmatmul.f32.vlgmr.msra.gmra.mxu0 %v988_v23  ;;  %1025 = vmatmul.f32.vlgmr.msra.gmra.mxu1 %v988_v23 }
 0x26d   : > { %1045 = vmatmul.f32.vlgmr.msra.gmra.mxu2 %v988_v23  ;;  %1065 = vmatmul.f32.vlgmr.msra.gmra.mxu3 %v988_v23 }
 0x2e9   : > { %v1006_v21 = vpop.f32.mrf.mxu0  ;;  %v1026_v24 = vpop.f32.mrf.mxu1 }
 0x2ea   : > { %v1069_v27 = vadd.f32 %v1006_v21, %v2489_v25  ;;  %v1070_v29 = vadd.f32 %v1026_v24, %v2490_v28 }
 0x2ec   : > { %v1341_v30 = vmul.f32 -1.442695, %v1069_v27  ;;  %v1342_v59 = vmul.f32 -1.442695, %v1070_v29 }
 0x2ee   : > { %1491 = vpow2.f32 %v1341_v30 }
 0x2ef   : > { %1493 = vpow2.f32 %v1342_v59 }
 0x2f0   : > { %v1066_v31 = vpop.f32.mrf.mxu3  ;;  %v1046_v39 = vpop.f32.mrf.mxu2 }
 0x2f1   : > { %v1072_v33 = vadd.f32 %v1066_v31, %v2491_v32  ;;  %v1071_v45 = vadd.f32 %v1046_v39, %v2492_v44 }
 0x2f3   : > { %v1343_v34 = vmul.f32 -1.442695, %v1072_v33 }
 0x2f4   : > { %v1492_v35 = vpop.eup %1491 }
 0x2f5   : > { %v1494_v36 = vpop.eup %1493  ;;  %v1076_v37 = vadd.f32 1.0, %v1492_v35  ;;  %1495 = vpow2.f32 %v1343_v34 }
 0x2f6   : > { %v1095_v38 = vadd.f32 1.0, %v1494_v36 }
 0x2f7   : > { %1497 = vrcp.f32 %v1076_v37  ;;  %v1088_v58 = vand.u32 2147483648, %v1076_v37  ;;  %v1086_v4 = vand.u32 2147483647, %v1076_v37  ;;  %vm1082_vm7 = vweird.f32 %v1076_v37 }
 0x2f8   : > { %1499 = vrcp.f32 %v1095_v38  ;;  %v1107_v56 = vand.u32 2147483648, %v1095_v38  ;;  %v1105_v8 = vand.u32 2147483647, %v1095_v38  ;;  %vm1101_vm8 = vweird.f32 %v1095_v38 }
 0x2f9   : > { %v1089_v3 = vor.u32 1.1754944e-38, %v1088_v58  ;;  %vm1087_vm11 = vcmp.eq.f32.partialorder %v1086_v4, 8.507059e+37 }
 0x2fa   : > { %v1108_v6 = vor.u32 1.1754944e-38, %v1107_v56  ;;  %vm1106_vm12 = vcmp.eq.f32.partialorder %v1105_v8, 8.507059e+37 }
 0x2fb   : > { %v1496_v40 = vpop.eup %1495 }
 0x2fc   : > { %v1115_v41 = vadd.f32 1.0, %v1496_v40 }
 0x2fd   : > { %v1498_v42 = vpop.eup %1497 }
 0x2fe   : > { %v1500_v46 = vpop.eup %1499  ;;  %v1078_v47 = vmul.f32 %v1498_v42, %v1076_v37  ;;  %1501 = vrcp.f32 %v1115_v41  ;;  %vm1083_vm5 = vweird.f32 %v1498_v42  ;;  %v1127_v54 = vand.u32 2147483648, %v1115_v41 }
 0x2ff   : > { %v1097_v48 = vmul.f32 %v1500_v46, %v1095_v38  ;;  %1503 = vtanh.f32 %v1071_v45  ;;  %vm1102_vm6 = vweird.f32 %v1500_v46  ;;  %vm1084_vm9 = vmor %vm1082_vm7, %vm1083_vm5  ;;  %vm1121_vm14 = vweird.f32 %v1115_v41 }
 0x300   : > { %v1079_v49 = vsub.f32 1.0, %v1078_v47  ;;  %vm1103_vm10 = vmor %vm1101_vm8, %vm1102_vm6  ;;  %v1125_v10 = vand.u32 2147483647, %v1115_v41  ;;  %v1128_v12 = vor.u32 1.1754944e-38, %v1127_v54 }
 0x301   : > { %v1098_v60 = vsub.f32 1.0, %v1097_v48 }
 0x302   : > { %v1080_v53 = vmul.f32 %v1498_v42, %v1079_v49  ;;  %vm1126_vm0 = vcmp.eq.f32.partialorder %v1125_v10, 8.507059e+37 }
 0x303   : > { %v1099_v9 = vmul.f32 %v1500_v46, %v1098_v60 }
 0x304   : > { %v1502_v1 = vpop.eup %1501  ;;  %v1081_v63 = vadd.f32 %v1498_v42, %v1080_v53 }
 0x305   : > { %v1100_v5 = vadd.f32 %v1500_v46, %v1099_v9  ;;  %v1117_v55 = vmul.f32 %v1502_v1, %v1115_v41  ;;  %v1504_v0 = vpop.eup %1503  ;;  %vm1122_vm13 = vweird.f32 %v1502_v1 }
 0x306   : > { %v1085_v61 = vsel %vm1084_vm9, %v1498_v42, %v1081_v63  ;;  %vm1123_vm15 = vmor %vm1121_vm14, %vm1122_vm13 }
 0x307   : > { %v1090_v51 = vsel %vm1087_vm11, %v1089_v3, %v1085_v61  ;;  %v1104_v7 = vsel %vm1103_vm10, %v1500_v46, %v1100_v5  ;;  %v1118_v43 = vsub.f32 1.0, %v1117_v55 }
 0x308   : > { %v1109_v62 = vsel %vm1106_vm12, %v1108_v6, %v1104_v7  ;;  %v1132_v57 = vmul.f32 %v1504_v0, %v1090_v51 }
 0x309   : > { %v1131_v52 = vmul.f32 %v1109_v62, %v2348_v14  ;;  %v1119_v50 = vmul.f32 %v1502_v1, %v1118_v43 }
 0x30b   : > { %v1133_v2 = vadd.f32 %v1132_v57, %v1131_v52  ;;  %v1120_v26 = vadd.f32 %v1502_v1, %v1119_v50 }
 0x30d   : > { %1505 = vtanh.f32 %v1133_v2  ;;  %1137 = vst [vmem:[#allocation3] sm:$0xff] %v1133_v2  ;;  %v1124_v11 = vsel %vm1123_vm15, %v1502_v1, %v1120_v26 }
 0x30e   : > { %v1129_v15 = vsel %vm1126_vm0, %v1128_v12, %v1124_v11 }
 0x312   : > { %1141 = sbr.rel (%p1344_p1) target bundleno = 980 (0x3d4), region = 72 }
 0x313   : > { %v1506_v13 = vpop.eup %1505 }
 0x314   : > { %v1135_v16 = vmul.f32 %v1506_v13, %v1129_v15 }
 0x316   : > { %1136 = vst [vmem:[#allocation2] sm:$0xff] %v1135_v16 }
 0x317   : > { %v1157_v14 = vld [vmem:[#allocation13 + $0x78] sm:$0xff]  ;;  %v1156_v17 = vld [vmem:[#allocation13 + $0x70] sm:$0xff]  ;;  %v1155_v18 = vld [vmem:[#allocation13 + $0x68] sm:$0xff] }
 0x318   : > { %1162 = vmatpush.msra.mxu0 %v1157_v14  ;;  %v1154_v19 = vld [vmem:[#allocation13 + $0x60] sm:$0xff]  ;;  %v1153_v20 = vld [vmem:[#allocation13 + $0x58] sm:$0xff]  ;;  %v1152_v22 = vld [vmem:[#allocation13 + $0x50] sm:$0xff] }
 0x319   : > { %v1151_v23 = vld [vmem:[#allocation13 + $0x48] sm:$0xff]  ;;  %v1150_v21 = vld [vmem:[#allocation13 + $0x40] sm:$0xff]  ;;  %v1149_v24 = vld [vmem:[#allocation13 + $0x38] sm:$0xff] }
 0x31a   : > { %1163 = vmatpush.msra.mxu0 %v1156_v17  ;;  %v1148_v25 = vld [vmem:[#allocation13 + $0x30] sm:$0xff]  ;;  %v1147_v27 = vld [vmem:[#allocation13 + $0x28] sm:$0xff]  ;;  %v1146_v28 = vld [vmem:[#allocation13 + $0x20] sm:$0xff] }
 0x31b   : > { %v1145_v29 = vld [vmem:[#allocation13 + $0x18] sm:$0xff]  ;;  %v1144_v30 = vld [vmem:[#allocation13 + $0x10] sm:$0xff]  ;;  %v1143_v59 = vld [vmem:[#allocation13 + $0x8] sm:$0xff] }
 0x31c   : > { %1164 = vmatpush.msra.mxu0 %v1155_v18  ;;  %v1142_v31 = vld [vmem:[#allocation13] sm:$0xff]  ;;  %v1507_v32 = vld [vmem:[%s2382_s5] ss:$0 sm:$0xff] }
 0x31e   : > { %1165 = vmatpush.msra.mxu0 %v1154_v19 }
 0x320   : > { %1166 = vmatpush.msra.mxu0 %v1153_v20 }
 0x322   : > { %1167 = vmatpush.msra.mxu0 %v1152_v22 }
 0x324   : > { %1168 = vmatpush.msra.mxu0 %v1151_v23 }
 0x326   : > { %1169 = vmatpush.msra.mxu0 %v1150_v21 }
 0x328   : > { %1170 = vmatpush.msra.mxu0 %v1149_v24 }
 0x32a   : > { %1171 = vmatpush.msra.mxu0 %v1148_v25 }
 0x32c   : > { %1172 = vmatpush.msra.mxu0 %v1147_v27 }
 0x32e   : > { %1173 = vmatpush.msra.mxu0 %v1146_v28 }
 0x330   : > { %1174 = vmatpush.msra.mxu0 %v1145_v29 }
 0x332   : > { %1175 = vmatpush.msra.mxu0 %v1144_v30 }
 0x334   : > { %1176 = vmatpush.msra.mxu0 %v1143_v59 }
 0x336   : > { %1177 = vmatpush.msra.mxu0 %v1142_v31 }
 0x337   : > { %1178 = vmatmul.f32.vlgmr.msra.gmra.mxu0 %v1135_v16 }
 0x3b4   : > { %v1179_v33 = vpop.f32.mrf.mxu0 }
 0x3b5   : > { %v1180_v34 = vadd.f32 %v1507_v32, %v1179_v33 }
 0x3b7   : > { %v1345_v35 = vmul.f32 -1.442695, %v1180_v34 }
 0x3b9   : > { %1508 = vpow2.f32 %v1345_v35 }
 0x3bf   : > { %v1509_v36 = vpop.eup %1508 }
 0x3c0   : > { %v1185_v37 = vadd.f32 1.0, %v1509_v36 }
 0x3c2   : > { %1510 = vrcp.f32 %v1185_v37  ;;  %v1197_v41 = vand.u32 2147483648, %v1185_v37  ;;  %v1195_v44 = vand.u32 2147483647, %v1185_v37  ;;  %vm1191_vm2 = vweird.f32 %v1185_v37 }
 0x3c4   : > { %v1198_v46 = vor.u32 1.1754944e-38, %v1197_v41  ;;  %vm1196_vm4 = vcmp.eq.f32.partialorder %v1195_v44, 8.507059e+37 }
 0x3c8   : > { %v1511_v38 = vpop.eup %1510 }
 0x3c9   : > { %v1187_v39 = vmul.f32 %v1511_v38, %v1185_v37  ;;  %vm1192_vm1 = vweird.f32 %v1511_v38 }
 0x3ca   : > { %vm1193_vm3 = vmor %vm1191_vm2, %vm1192_vm1 }
 0x3cb   : > { %v1188_v40 = vsub.f32 1.0, %v1187_v39 }
 0x3cd   : > { %v1189_v42 = vmul.f32 %v1511_v38, %v1188_v40 }
 0x3cf   : > { %v1190_v45 = vadd.f32 %v1511_v38, %v1189_v42 }
 0x3d1   : > { %v1194_v47 = vsel %vm1193_vm3, %v1511_v38, %v1190_v45 }
 0x3d2   : > { %v1199_v48 = vsel %vm1196_vm4, %v1198_v46, %v1194_v47 }
 0x3d3   : > { %1201 = vst [vmem:[#allocation14] sm:$0xff] %v1199_v48 }
 0x3d4 PF: > { %p1399_p4 = scmp.eq.s32.totalorder %s1802_s25, 1  ;;  %s1747_s10 = smov [#allocation14]  }
 0x3d5   : > { %s1208_s11 = sshll.u32 %s1747_s10, 4  ;;  %s1210_s29 = sshll.u32 %s2383_s6, 4  ;;  %s1209_s11 = int_to_ptr.vmem [resolvable:$true] %s1208_s11  ;;  %s1211_s29 = int_to_ptr.hbm [resolvable:$true] %s1210_s29 }
 0x3d6   : > { %1370 = dma.vmem_to_hbm [thread:$0]  (%p1399_p4), %s1209_s11, 128, %s1211_s29, [#allocation7]  }
 0x3d7   : > { %1719 = dma.done.wait (%p1399_p4), [#allocation7], 128  }
 0x3d8   : > { %1721 = vsyncadd (%p1399_p4), [#allocation7], 4294967168 }
 0x3d9 PF: > { %p19_p5 = scmp.ge.s32.totalorder %s1851_s12, 4   ;;  %s2493_s21 = smov %s1728_s22 }
 0x3da   : > { %s2494_s22 = smov %s1732_s23  ;;  %s2495_s23 = smov %s1860_s13 }
 0x3db   : > { %s2496_s24 = smov %s1851_s12  ;;  %21 = sbr.rel (!%p19_p5) target bundleno = 6 (0x6), region = 105 }
 0x3e0   :  { %1224 = vsyncpa [#allocation6], 1 }
 0x3e1   :  { %1226 = vsyncpa [#allocation6 + $0x1], 1 }
 0x3e2   :  { %1227 = vsyncpa [#allocation9], 1 }
 0x3e3   :  { %1228 = vsyncpa [#allocation12], 1 }
 0x3e4   :  { %1229 = vsyncpa [#allocation7], 1 }
 0x3e5   :  { %1231 = vsyncpa [#allocation7 + $0x1], 1 }

</bundles_post_ra>
